<compile_context>
chip_gen: v5e
topology: v5e:2x2
jax: 0.10.0
libtpu: 0.0.40
codegen_flags: <defaults>
</compile_context>

<pallas_src>
import functools
import math

import jax
import jax.numpy as jnp
from jax import lax
from jax.experimental import pallas as pl
from jax.experimental.pallas import tpu as pltpu

LN_EPS = 1e-8
MASK_NEG = -1e30          # large finite negative (NaN-safe additive mask)
LANE = 128


def _round_up(x, m):
    return (x + m - 1) // m * m


def _pick_tb(n):
    """Sequences packed per grid step along the (parallel) batch axis.

    Always tries to leave >= 2 batch blocks so v7x's second TensorCore gets
    work; prefers sublane-friendly tiles for larger batches.
    """
    for tb in (32, 16, 8, 4, 2):
        if n % tb == 0 and n // tb >= 2:
            return tb
    return 1 if n > 1 else n


def _masked_layer_norm(x, g, b, mask, inv_n, eps):
    """LayerNorm over the TRUE hidden size when the lane dim is zero-padded.

    Requires x == 0 in pad lanes (maintained throughout the kernel); returns 0
    in pad lanes (g/b are zero-padded).
    """
    mu = jnp.sum(x, axis=-1, keepdims=True) * inv_n
    xc = (x - mu) * mask
    var = jnp.sum(xc * xc, axis=-1, keepdims=True) * inv_n
    return xc * lax.rsqrt(var + eps) * g + b


# ---------------------------------------------------------------------------
# Fused kernel: all transformer blocks + CAPE + final LN + logits.
# grid = (batch_tiles, num_blocks); activations carried in VMEM scratch.
# ---------------------------------------------------------------------------
def sasrec_fused_kernel(x_ref, masks_ref, bvecs_ref, wqp_ref, bqp_ref,
                        wkv_ref, bkv_ref, wstack_ref, cpe_ref, hvecs_ref,
                        pos_ref, neg_ref, out_ref, act_ref,
                        *, eps, scale, inv_e, inv_l, max_len, tb, seq_len,
                        e_pad, n_blocks):
    L, Ep = seq_len, e_pad
    M = tb * L
    lblk = pl.program_id(1)

    # Block 0: seed the VMEM-resident activation from the streamed input tile.
    @pl.when(lblk == 0)
    def _():
        act_ref[...] = x_ref[...].reshape(M, Ep)

    x2 = act_ref[...]                                  # (M, Ep) f32, pads == 0

    masks = masks_ref[...]
    tril = masks[0]                                    # (L, L) 1/0 lower-tri
    addm = masks[1]                                    # (L, L) additive mask

    hv = hvecs_ref[...]                                # (3, Ep)
    lane_mask = hv[2:3]                                # 1.0 on real lanes

    vecs = bvecs_ref[0]                                # (8, Ep) per-block vecs
    aln_g, aln_b = vecs[0:1], vecs[1:2]
    bo = vecs[2:3]
    fln_g, fln_b = vecs[3:4], vecs[4:5]
    b1, b2 = vecs[5:6], vecs[6:7]

    wqp = wqp_ref[0]                                   # (Ep, 2Ep) bf16
    wkv = wkv_ref[0]                                   # (Ep, 2Ep) bf16
    wstack = wstack_ref[...]                           # (3, Ep, Ep) bf16
    wo, w1, w2 = wstack[0], wstack[1], wstack[2]
    bqp = bqp_ref[0]                                   # (1, 2Ep) f32
    bkv = bkv_ref[0]

    # ---- attention layernorm (query only) ----------------------------------
    q_norm = _masked_layer_norm(x2, aln_g, aln_b, lane_mask, inv_e, eps)

    # ---- fused projections (bf16 MXU operands, f32 accumulate) -------------
    qp = jnp.dot(q_norm.astype(jnp.bfloat16), wqp,
                 preferred_element_type=jnp.float32) + bqp
    kv = jnp.dot(x2.astype(jnp.bfloat16), wkv,
                 preferred_element_type=jnp.float32) + bkv
    q, h = qp[:, :Ep], qp[:, Ep:]
    k, v = kv[:, :Ep], kv[:, Ep:]

    # ---- single-head causal attention, batched over the tb sequences -------
    q3 = (q * scale).astype(jnp.bfloat16).reshape(tb, L, Ep)
    k3 = k.astype(jnp.bfloat16).reshape(tb, L, Ep)
    v3 = v.astype(jnp.bfloat16).reshape(tb, L, Ep)
    # NOTE: if the bundle dump shows per-batch vxpose of k3, pre-transpose K
    # at the projection instead.
    scores = jnp.einsum('bqd,bkd->bqk', q3, k3,
                        preferred_element_type=jnp.float32)       # (tb,L,L)
    scores = scores + addm[None]                       # additive causal mask
    mx = jnp.max(scores, axis=-1, keepdims=True)
    ex = jnp.exp(scores - mx)
    denom = jnp.sum(ex, axis=-1, keepdims=True)
    attn = ex * pl.reciprocal(denom, approx=False)     # exact: feeds CAPE's P
    ctx = jnp.einsum('bqk,bkd->bqd', attn.astype(jnp.bfloat16), v3,
                     preferred_element_type=jnp.float32)
    mha = jnp.dot(ctx.reshape(M, Ep).astype(jnp.bfloat16), wo,
                  preferred_element_type=jnp.float32) + bo
    seqs = q_norm + mha                                # residual on LN(Q)

    # ---- CAPE ---------------------------------------------------------------
    h = h * jax.nn.sigmoid(h)                          # pre_proj SiLU (f32)
    emat = jnp.dot(h.astype(jnp.bfloat16), cpe_ref[...],
                   preferred_element_type=jnp.float32)  # (M, max_len)

    attn2 = attn.reshape(M, L)
    g_gate = 1.0 - jax.nn.sigmoid(attn2)
    # reverse cumsum over the kv axis: P[r, j] = sum_{k >= j} g_gate[r, k]
    P = jnp.dot(g_gate, tril, preferred_element_type=jnp.float32)
    P = jnp.minimum(P, jnp.float32(max_len - 1))

    # Linear-interp gather reformulated as a triangular-kernel weight matrix:
    #   interp(emat[r,:], P[r,j]) == sum_m emat[r,m] * max(0, 1 - |P[r,j]-m|)
    #   mean_j interp(...)        == (1/L) * sum_m emat[r,m] * W[r,m]
    # with W[r,m] = sum_j max(0, 1 - |P[r,j]-m|).  One lane-dense (M,max_len)
    # accumulator, no compares/selects/floor/ceil, one XLU reduce at the end.
    mrow = lax.broadcasted_iota(jnp.int32, (1, max_len), 1).astype(jnp.float32)
    wmat = jnp.zeros((M, max_len), jnp.float32)
    # TODO(synk): for long sequences replace this static unroll with a chunked
    # lax.fori_loop to bound compile time and live ranges.
    for j in range(L):
        wmat = wmat + jnp.maximum(1.0 - jnp.abs(P[:, j:j + 1] - mrow), 0.0)
    cape = jnp.sum(emat * wmat, axis=-1, keepdims=True) * inv_l      # (M, 1)
    seqs = seqs + cape * lane_mask          # broadcast over hidden; pads stay 0

    # ---- forward layernorm + pointwise FFN (residual on the LN output) -----
    hn = _masked_layer_norm(seqs, fln_g, fln_b, lane_mask, inv_e, eps)
    f1 = jnp.maximum(jnp.dot(hn.astype(jnp.bfloat16), w1,
                             preferred_element_type=jnp.float32) + b1, 0.0)
    f2 = jnp.dot(f1.astype(jnp.bfloat16), w2,
                 preferred_element_type=jnp.float32) + b2
    act_ref[...] = f2 + hn                  # VMEM-resident block output

    # ---- last block: final layernorm + pos/neg logits -----------------------
    @pl.when(lblk == n_blocks - 1)
    def _():
        lf = _masked_layer_norm(act_ref[...], hv[0:1], hv[1:2],
                                lane_mask, inv_e, eps)
        lf3 = lf.reshape(tb, L, Ep)
        pos = jnp.sum(lf3 * pos_ref[...], axis=-1)     # (tb, L)
        neg = jnp.sum(lf3 * neg_ref[...], axis=-1)
        out_ref[:, 0:1, :] = pos.reshape(tb, 1, L)
        out_ref[:, 1:2, :] = neg.reshape(tb, 1, L)


def _fused_forward(x, pos_e, neg_e, p, *, hidden, maxlen, num_blocks):
    N, L, Ep = x.shape
    tb = _pick_tb(N)
    kernel = functools.partial(
        sasrec_fused_kernel, eps=LN_EPS, scale=1.0 / math.sqrt(hidden),
        inv_e=1.0 / hidden, inv_l=1.0 / L, max_len=maxlen, tb=tb,
        seq_len=L, e_pad=Ep, n_blocks=num_blocks)

    bmap = lambda b, l: (b, 0, 0)     # streamed per-batch-tile inputs/output
    wmap = lambda b, l: (l, 0, 0)     # per-transformer-block weights
    cmap2 = lambda b, l: (0, 0)       # constants (fetched once)
    cmap3 = lambda b, l: (0, 0, 0)

    in_specs = [
        pl.BlockSpec((tb, L, Ep), bmap),          # x (embedded log_seqs)
        pl.BlockSpec((2, L, L), cmap3),           # [tril, additive causal mask]
        pl.BlockSpec((1, 8, Ep), wmap),           # per-block LN/bias vectors
        pl.BlockSpec((1, Ep, 2 * Ep), wmap),      # [Wq | CAPE Wp]   (bf16)
        pl.BlockSpec((1, 1, 2 * Ep), wmap),       # [bq | CAPE bp]
        pl.BlockSpec((1, Ep, 2 * Ep), wmap),      # [Wk | Wv]        (bf16)
        pl.BlockSpec((1, 1, 2 * Ep), wmap),       # [bk | bv]
        pl.BlockSpec((3, Ep, Ep), wmap),          # [Wo, W1, W2]     (bf16)
        pl.BlockSpec((Ep, maxlen), cmap2),        # CAPE pos_emb     (bf16)
        pl.BlockSpec((3, Ep), cmap2),             # [last_g, last_b, lane_mask]
        pl.BlockSpec((tb, L, Ep), bmap),          # pos item embeddings
        pl.BlockSpec((tb, L, Ep), bmap),          # neg item embeddings
    ]
    out_spec = pl.BlockSpec((tb, 2, L), bmap)

    # Rough per-call VMEM footprint; only raise the scoped limit when the
    # defaults would be tight, and never past v7x's 64 MiB/TC.
    f32b, bf16b = 4, 2
    stream = (3 * tb * L * Ep + tb * 2 * L) * f32b
    wblk = (2 * Ep * 2 * Ep + 3 * Ep * Ep) * bf16b + (2 * 2 * Ep + 8 * Ep) * f32b
    consts = (2 * L * L + 3 * Ep) * f32b + Ep * maxlen * bf16b
    interm = tb * L * (8 * Ep + 4 * L + 3 * maxlen) * f32b
    vmem_est = 2 * (stream + wblk) + consts + tb * L * Ep * f32b + interm
    vmem_limit = None
    if vmem_est > 24 * (1 << 20):
        vmem_limit = min(int(1.5 * vmem_est), 60 * (1 << 20))

    return pl.pallas_call(
        kernel,
        out_shape=jax.ShapeDtypeStruct((N, 2, L), jnp.float32),
        grid=(N // tb, num_blocks),
        in_specs=in_specs,
        out_specs=out_spec,
        scratch_shapes=[pltpu.VMEM((tb * L, Ep), jnp.float32)],
        compiler_params=pltpu.CompilerParams(
            dimension_semantics=("parallel", "arbitrary"),
            vmem_limit_bytes=vmem_limit),
    )(x, p["masks"], p["bvecs"], p["wqp"], p["bqp"], p["wkv"], p["bkv"],
      p["wstack"], p["cpe"], p["hvecs"], pos_e, neg_e)


# ---------------------------------------------------------------------------
# Full forward (embedding lookups / glue stay in plain JAX)
# ---------------------------------------------------------------------------
def sasrec_cape_forward(params, log_seqs, pos_seqs, neg_seqs, *,
                        hidden, maxlen, num_blocks):
    item_emb = params["item_emb"]              # (items+1, Ep), pad lanes zero
    x = jnp.take(item_emb, log_seqs, axis=0) * jnp.float32(math.sqrt(hidden))
    # emb_dropout: identity (eval mode)
    pos_e = jnp.take(item_emb, pos_seqs, axis=0)
    neg_e = jnp.take(item_emb, neg_seqs, axis=0)
    logits = _fused_forward(x, pos_e, neg_e, params,
                            hidden=hidden, maxlen=maxlen, num_blocks=num_blocks)
    return logits[:, 0, :], logits[:, 1, :]


# ---------------------------------------------------------------------------
# Deterministic parameter initialization (true sizes, PyTorch-like layout) and
# host-side packing into the padded / fused / stacked kernel layout.
# ---------------------------------------------------------------------------
def init_params(key, item_num, hidden, maxlen, num_blocks):
    keys = iter(jax.random.split(key, 64))

    def nrm(shape, s=0.1):
        return s * jax.random.normal(next(keys), shape, jnp.float32)

    item_emb = nrm((item_num + 1, hidden), 0.5)
    item_emb = item_emb.at[0].set(0.0)           # padding_idx = 0

    blocks = []
    for _ in range(num_blocks):
        blocks.append(dict(
            aln_g=1.0 + nrm((1, hidden)), aln_b=nrm((1, hidden)),
            wqT=nrm((hidden, hidden)), wkT=nrm((hidden, hidden)),
            wvT=nrm((hidden, hidden)),
            bq=nrm((1, hidden)), bk=nrm((1, hidden)), bv=nrm((1, hidden)),
            woT=nrm((hidden, hidden)), bo=nrm((1, hidden)),
            fln_g=1.0 + nrm((1, hidden)), fln_b=nrm((1, hidden)),
            w1T=nrm((hidden, hidden)), b1=nrm((1, hidden)),
            w2T=nrm((hidden, hidden)), b2=nrm((1, hidden)),
        ))

    cape = dict(
        wpT=nrm((hidden, hidden)), bp=nrm((1, hidden)),
        # PyTorch zero-initializes pos_emb; randomized so the interpolation
        # path is exercised.
        pe=nrm((hidden, maxlen), 0.3),
    )
    last_ln_g = 1.0 + nrm((1, hidden))
    last_ln_b = nrm((1, hidden))
    return dict(item_emb=item_emb, blocks=blocks, cape=cape,
                last_ln_g=last_ln_g, last_ln_b=last_ln_b)


def _pad_last(a, ep):
    pad = ep - a.shape[-1]
    if pad == 0:
        return a
    return jnp.pad(a, [(0, 0)] * (a.ndim - 1) + [(0, pad)])


def _pad_mat(a, ep):
    return jnp.pad(a, [(0, ep - a.shape[0]), (0, ep - a.shape[1])])


def pack_params(raw, hidden, maxlen, num_blocks):
    ep = _round_up(hidden, LANE)
    cape = raw["cape"]
    wp = _pad_mat(cape["wpT"], ep)
    bp = _pad_last(cape["bp"], ep)

    wqp, bqp, wkv, bkv, bvecs, wstack = [], [], [], [], [], []
    for blk in raw["blocks"]:
        wqp.append(jnp.concatenate([_pad_mat(blk["wqT"], ep), wp], axis=1))
        bqp.append(jnp.concatenate([_pad_last(blk["bq"], ep), bp], axis=1))
        wkv.append(jnp.concatenate([_pad_mat(blk["wkT"], ep),
                                    _pad_mat(blk["wvT"], ep)], axis=1))
        bkv.append(jnp.concatenate([_pad_last(blk["bk"], ep),
                                    _pad_last(blk["bv"], ep)], axis=1))
        bvecs.append(jnp.concatenate(
            [_pad_last(blk["aln_g"], ep), _pad_last(blk["aln_b"], ep),
             _pad_last(blk["bo"], ep), _pad_last(blk["fln_g"], ep),
             _pad_last(blk["fln_b"], ep), _pad_last(blk["b1"], ep),
             _pad_last(blk["b2"], ep), jnp.zeros((1, ep), jnp.float32)],
            axis=0))
        wstack.append(jnp.stack([_pad_mat(blk["woT"], ep),
                                 _pad_mat(blk["w1T"], ep),
                                 _pad_mat(blk["w2T"], ep)], axis=0))

    tril = jnp.tril(jnp.ones((maxlen, maxlen), jnp.float32))
    masks = jnp.stack([tril, (1.0 - tril) * MASK_NEG], axis=0)

    lane_mask = (jnp.arange(ep) < hidden).astype(jnp.float32).reshape(1, ep)
    hvecs = jnp.concatenate([_pad_last(raw["last_ln_g"], ep),
                             _pad_last(raw["last_ln_b"], ep),
                             lane_mask], axis=0)

    return dict(
        item_emb=_pad_last(raw["item_emb"], ep),                       # (I+1, Ep)
        masks=masks,                                                   # (2, L, L)
        bvecs=jnp.stack(bvecs, axis=0),                                # (nb, 8, Ep)
        wqp=jnp.stack(wqp, axis=0).astype(jnp.bfloat16),               # (nb, Ep, 2Ep)
        bqp=jnp.stack(bqp, axis=0),                                    # (nb, 1, 2Ep)
        wkv=jnp.stack(wkv, axis=0).astype(jnp.bfloat16),               # (nb, Ep, 2Ep)
        bkv=jnp.stack(bkv, axis=0),                                    # (nb, 1, 2Ep)
        wstack=jnp.concatenate(wstack, axis=0).astype(jnp.bfloat16),   # (3nb, Ep, Ep)
        cpe=jnp.pad(cape["pe"], [(0, ep - hidden), (0, 0)]).astype(jnp.bfloat16),
        hvecs=hvecs,                                                   # (3, Ep)
    )


if __name__ == "__main__":
    # small config consistent with the module
    batch = 2
    maxlen = 8          # seq length == args.maxlen == CAPE max_len
    hidden = 32         # args.hidden_units
    num_blocks = 2      # args.num_blocks
    item_num = 50
    user_num = 10

    key = jax.random.PRNGKey(0)
    kp, k1, k2, k3, k4 = jax.random.split(key, 5)

    raw_params = init_params(kp, item_num, hidden, maxlen, num_blocks)
    params = pack_params(raw_params, hidden, maxlen, num_blocks)

    user_ids = jax.random.randint(k1, (batch,), 1, user_num + 1, dtype=jnp.int32)  # unused (parity)
    log_seqs = jax.random.randint(k2, (batch, maxlen), 1, item_num + 1, dtype=jnp.int32)
    pos_seqs = jax.random.randint(k3, (batch, maxlen), 1, item_num + 1, dtype=jnp.int32)
    neg_seqs = jax.random.randint(k4, (batch, maxlen), 1, item_num + 1, dtype=jnp.int32)

    fwd = jax.jit(functools.partial(sasrec_cape_forward, hidden=hidden,
                                    maxlen=maxlen, num_blocks=num_blocks))
    pos_logits, neg_logits = fwd(params, log_seqs, pos_seqs, neg_seqs)
    jax.block_until_ready((pos_logits, neg_logits))

    assert pos_logits.shape == (batch, maxlen) and neg_logits.shape == (batch, maxlen)
    assert bool(jnp.all(jnp.isfinite(pos_logits))) and bool(jnp.all(jnp.isfinite(neg_logits)))
    print("KERNEL_OK")
</pallas_src>

<mosaic_0001>
module attributes {stable_mosaic.version = 11 : i64} {
  func.func @sasrec_fused_kernel(%arg0: i32, %arg1: i32, %arg2: memref<1x8x128xf32, #tpu.memory_space<vmem>>, %arg3: memref<2x8x8xf32, #tpu.memory_space<vmem>>, %arg4: memref<1x8x128xf32, #tpu.memory_space<vmem>>, %arg5: memref<1x128x256xbf16, #tpu.memory_space<vmem>>, %arg6: memref<1x1x256xf32, #tpu.memory_space<vmem>>, %arg7: memref<1x128x256xbf16, #tpu.memory_space<vmem>>, %arg8: memref<1x1x256xf32, #tpu.memory_space<vmem>>, %arg9: memref<3x128x128xbf16, #tpu.memory_space<vmem>>, %arg10: memref<128x8xbf16, #tpu.memory_space<vmem>>, %arg11: memref<3x128xf32, #tpu.memory_space<vmem>>, %arg12: memref<1x8x128xf32, #tpu.memory_space<vmem>>, %arg13: memref<1x8x128xf32, #tpu.memory_space<vmem>>, %arg14: memref<1x2x8xf32, #tpu.memory_space<vmem>>, %arg15: memref<8x128xf32, #tpu.memory_space<vmem>>) attributes {dimension_semantics = [#tpu.dimension_semantics<parallel>, #tpu.dimension_semantics<arbitrary>], iteration_bounds = array<i64: 2, 2>, scalar_prefetch = 0 : i64, scratch_operands = 1 : i64, tpu.core_type = #tpu.core_type<tc>, window_params = [{transform_indices = @transform_0, window_bounds = array<i64: 1, 8, 128>}, {pipeline_mode = #tpu.pipeline_mode<synchronous>, transform_indices = @transform_1, window_bounds = array<i64: 2, 8, 8>}, {transform_indices = @transform_2, window_bounds = array<i64: 1, 8, 128>}, {transform_indices = @transform_3, window_bounds = array<i64: 1, 128, 256>}, {transform_indices = @transform_4, window_bounds = array<i64: 1, 1, 256>}, {transform_indices = @transform_5, window_bounds = array<i64: 1, 128, 256>}, {transform_indices = @transform_6, window_bounds = array<i64: 1, 1, 256>}, {transform_indices = @transform_7, window_bounds = array<i64: 3, 128, 128>}, {pipeline_mode = #tpu.pipeline_mode<synchronous>, transform_indices = @transform_8, window_bounds = array<i64: 128, 8>}, {pipeline_mode = #tpu.pipeline_mode<synchronous>, transform_indices = @transform_9, window_bounds = array<i64: 3, 128>}, {transform_indices = @transform_10, window_bounds = array<i64: 1, 8, 128>}, {transform_indices = @transform_11, window_bounds = array<i64: 1, 8, 128>}, {transform_indices = @transform_12, window_bounds = array<i64: 1, 2, 8>}]} {
    %c0_i32 = arith.constant 0 : i32
    %0 = arith.cmpi eq, %arg1, %c0_i32 : i32
    %1 = arith.extui %0 : i1 to i32
    %c0_i32_0 = arith.constant 0 : i32
    %2 = arith.cmpi ne, %1, %c0_i32_0 : i32
    scf.if %2 {
      %c0_75 = arith.constant 0 : index
      %c0_76 = arith.constant 0 : index
      %c0_77 = arith.constant 0 : index
      %247 = vector.load %arg2[%c0_75, %c0_76, %c0_77] : memref<1x8x128xf32, #tpu.memory_space<vmem>>, vector<1x8x128xf32>
      %248 = vector.shape_cast %247 : vector<1x8x128xf32> to vector<8x128xf32>
      %c0_78 = arith.constant 0 : index
      %c0_79 = arith.constant 0 : index
      %249 = vector.load %arg15[%c0_78, %c0_79] : memref<8x128xf32, #tpu.memory_space<vmem>>, vector<8x128xf32>
      tpu.vector_store %arg15[%c0_78, %c0_79], %248 {strides = array<i32>} : memref<8x128xf32, #tpu.memory_space<vmem>>, vector<8x128xf32>,
    } else {
    }
    %c0 = arith.constant 0 : index
    %c0_1 = arith.constant 0 : index
    %3 = vector.load %arg15[%c0, %c0_1] : memref<8x128xf32, #tpu.memory_space<vmem>>, vector<8x128xf32>
    %c0_2 = arith.constant 0 : index
    %c0_3 = arith.constant 0 : index
    %c0_4 = arith.constant 0 : index
    %4 = vector.load %arg3[%c0_2, %c0_3, %c0_4] : memref<2x8x8xf32, #tpu.memory_space<vmem>>, vector<2x8x8xf32>
    %5 = vector.extract_strided_slice %4 {offsets = [0, 0, 0], sizes = [1, 8, 8], strides = [1, 1, 1]} : vector<2x8x8xf32> to vector<1x8x8xf32>
    %6 = vector.shape_cast %5 : vector<1x8x8xf32> to vector<8x8xf32>
    %7 = vector.extract_strided_slice %4 {offsets = [1, 0, 0], sizes = [1, 8, 8], strides = [1, 1, 1]} : vector<2x8x8xf32> to vector<1x8x8xf32>
    %8 = vector.shape_cast %7 : vector<1x8x8xf32> to vector<8x8xf32>
    %c0_5 = arith.constant 0 : index
    %c0_6 = arith.constant 0 : index
    %9 = vector.load %arg11[%c0_5, %c0_6] : memref<3x128xf32, #tpu.memory_space<vmem>>, vector<3x128xf32>
    %10 = vector.extract_strided_slice %9 {offsets = [2, 0], sizes = [1, 128], strides = [1, 1]} : vector<3x128xf32> to vector<1x128xf32>
    %c0_7 = arith.constant 0 : index
    %c0_8 = arith.constant 0 : index
    %c0_9 = arith.constant 0 : index
    %11 = vector.load %arg4[%c0_7, %c0_8, %c0_9] : memref<1x8x128xf32, #tpu.memory_space<vmem>>, vector<1x8x128xf32>
    %12 = vector.shape_cast %11 : vector<1x8x128xf32> to vector<8x128xf32>
    %13 = vector.extract_strided_slice %12 {offsets = [0, 0], sizes = [1, 128], strides = [1, 1]} : vector<8x128xf32> to vector<1x128xf32>
    %14 = vector.extract_strided_slice %12 {offsets = [1, 0], sizes = [1, 128], strides = [1, 1]} : vector<8x128xf32> to vector<1x128xf32>
    %15 = vector.extract_strided_slice %12 {offsets = [2, 0], sizes = [1, 128], strides = [1, 1]} : vector<8x128xf32> to vector<1x128xf32>
    %16 = vector.extract_strided_slice %12 {offsets = [3, 0], sizes = [1, 128], strides = [1, 1]} : vector<8x128xf32> to vector<1x128xf32>
    %17 = vector.extract_strided_slice %12 {offsets = [4, 0], sizes = [1, 128], strides = [1, 1]} : vector<8x128xf32> to vector<1x128xf32>
    %18 = vector.extract_strided_slice %12 {offsets = [5, 0], sizes = [1, 128], strides = [1, 1]} : vector<8x128xf32> to vector<1x128xf32>
    %19 = vector.extract_strided_slice %12 {offsets = [6, 0], sizes = [1, 128], strides = [1, 1]} : vector<8x128xf32> to vector<1x128xf32>
    %c0_10 = arith.constant 0 : index
    %c0_11 = arith.constant 0 : index
    %c0_12 = arith.constant 0 : index
    %20 = vector.load %arg5[%c0_10, %c0_11, %c0_12] : memref<1x128x256xbf16, #tpu.memory_space<vmem>>, vector<1x128x256xbf16>
    %21 = vector.shape_cast %20 : vector<1x128x256xbf16> to vector<128x256xbf16>
    %c0_13 = arith.constant 0 : index
    %c0_14 = arith.constant 0 : index
    %c0_15 = arith.constant 0 : index
    %22 = vector.load %arg7[%c0_13, %c0_14, %c0_15] : memref<1x128x256xbf16, #tpu.memory_space<vmem>>, vector<1x128x256xbf16>
    %23 = vector.shape_cast %22 : vector<1x128x256xbf16> to vector<128x256xbf16>
    %c0_16 = arith.constant 0 : index
    %c0_17 = arith.constant 0 : index
    %c0_18 = arith.constant 0 : index
    %24 = vector.load %arg9[%c0_16, %c0_17, %c0_18] : memref<3x128x128xbf16, #tpu.memory_space<vmem>>, vector<3x128x128xbf16>
    %25 = vector.extract_strided_slice %24 {offsets = [0, 0, 0], sizes = [1, 128, 128], strides = [1, 1, 1]} : vector<3x128x128xbf16> to vector<1x128x128xbf16>
    %26 = vector.shape_cast %25 : vector<1x128x128xbf16> to vector<128x128xbf16>
    %27 = vector.extract_strided_slice %24 {offsets = [1, 0, 0], sizes = [1, 128, 128], strides = [1, 1, 1]} : vector<3x128x128xbf16> to vector<1x128x128xbf16>
    %28 = vector.shape_cast %27 : vector<1x128x128xbf16> to vector<128x128xbf16>
    %29 = vector.extract_strided_slice %24 {offsets = [2, 0, 0], sizes = [1, 128, 128], strides = [1, 1, 1]} : vector<3x128x128xbf16> to vector<1x128x128xbf16>
    %30 = vector.shape_cast %29 : vector<1x128x128xbf16> to vector<128x128xbf16>
    %c0_19 = arith.constant 0 : index
    %c0_20 = arith.constant 0 : index
    %c0_21 = arith.constant 0 : index
    %31 = vector.load %arg6[%c0_19, %c0_20, %c0_21] : memref<1x1x256xf32, #tpu.memory_space<vmem>>, vector<1x1x256xf32>
    %32 = vector.shape_cast %31 : vector<1x1x256xf32> to vector<1x256xf32>
    %c0_22 = arith.constant 0 : index
    %c0_23 = arith.constant 0 : index
    %c0_24 = arith.constant 0 : index
    %33 = vector.load %arg8[%c0_22, %c0_23, %c0_24] : memref<1x1x256xf32, #tpu.memory_space<vmem>>, vector<1x1x256xf32>
    %34 = vector.shape_cast %33 : vector<1x1x256xf32> to vector<1x256xf32>
    %cst = arith.constant dense<0.000000e+00> : vector<8xf32>
    %35 = vector.multi_reduction <add>, %3, %cst [1] : vector<8x128xf32> to vector<8xf32>
    %36 = vector.shape_cast %35 : vector<8xf32> to vector<8x1xf32>
    %cst_25 = arith.constant 3.125000e-02 : f32
    %37 = vector.broadcast %cst_25 : f32 to vector<8x1xf32>
    %38 = arith.mulf %36, %37 : vector<8x1xf32>
    %39 = vector.broadcast %38 : vector<8x1xf32> to vector<8x128xf32>
    %40 = arith.subf %3, %39 : vector<8x128xf32>
    %41 = vector.broadcast %10 : vector<1x128xf32> to vector<8x128xf32>
    %42 = arith.mulf %40, %41 : vector<8x128xf32>
    %43 = arith.mulf %42, %42 : vector<8x128xf32>
    %cst_26 = arith.constant dense<0.000000e+00> : vector<8xf32>
    %44 = vector.multi_reduction <add>, %43, %cst_26 [1] : vector<8x128xf32> to vector<8xf32>
    %45 = vector.shape_cast %44 : vector<8xf32> to vector<8x1xf32>
    %cst_27 = arith.constant 3.125000e-02 : f32
    %46 = vector.broadcast %cst_27 : f32 to vector<8x1xf32>
    %47 = arith.mulf %45, %46 : vector<8x1xf32>
    %cst_28 = arith.constant 9.99999993E-9 : f32
    %48 = vector.broadcast %cst_28 : f32 to vector<8x1xf32>
    %49 = arith.addf %47, %48 : vector<8x1xf32>
    %50 = math.rsqrt %49 : vector<8x1xf32>
    %51 = vector.broadcast %50 : vector<8x1xf32> to vector<8x128xf32>
    %52 = arith.mulf %42, %51 : vector<8x128xf32>
    %53 = vector.broadcast %13 : vector<1x128xf32> to vector<8x128xf32>
    %54 = arith.mulf %52, %53 : vector<8x128xf32>
    %55 = vector.broadcast %14 : vector<1x128xf32> to vector<8x128xf32>
    %56 = arith.addf %54, %55 : vector<8x128xf32>
    %57 = arith.truncf %56 : vector<8x128xf32> to vector<8x128xbf16>
    %cst_29 = arith.constant dense<0.000000e+00> : vector<8x256xf32>
    %58 = tpu.matmul %57, %21, %cst_29 {dimension_numbers = #tpu.dot_dimension_numbers<[1], [0], [0], [1], [0, 0, 1, 1], [], []>} : vector<8x128xbf16>, vector<128x256xbf16>, vector<8x256xf32> -> vector<8x256xf32>
    %59 = vector.broadcast %32 : vector<1x256xf32> to vector<8x256xf32>
    %60 = arith.addf %58, %59 : vector<8x256xf32>
    %61 = arith.truncf %3 : vector<8x128xf32> to vector<8x128xbf16>
    %cst_30 = arith.constant dense<0.000000e+00> : vector<8x256xf32>
    %62 = tpu.matmul %61, %23, %cst_30 {dimension_numbers = #tpu.dot_dimension_numbers<[1], [0], [0], [1], [0, 0, 1, 1], [], []>} : vector<8x128xbf16>, vector<128x256xbf16>, vector<8x256xf32> -> vector<8x256xf32>
    %63 = vector.broadcast %34 : vector<1x256xf32> to vector<8x256xf32>
    %64 = arith.addf %62, %63 : vector<8x256xf32>
    %65 = vector.extract_strided_slice %60 {offsets = [0, 0], sizes = [8, 128], strides = [1, 1]} : vector<8x256xf32> to vector<8x128xf32>
    %66 = vector.extract_strided_slice %60 {offsets = [0, 128], sizes = [8, 128], strides = [1, 1]} : vector<8x256xf32> to vector<8x128xf32>
    %67 = vector.extract_strided_slice %64 {offsets = [0, 0], sizes = [8, 128], strides = [1, 1]} : vector<8x256xf32> to vector<8x128xf32>
    %68 = vector.extract_strided_slice %64 {offsets = [0, 128], sizes = [8, 128], strides = [1, 1]} : vector<8x256xf32> to vector<8x128xf32>
    %cst_31 = arith.constant 0.176776692 : f32
    %69 = vector.broadcast %cst_31 : f32 to vector<8x128xf32>
    %70 = arith.mulf %65, %69 : vector<8x128xf32>
    %71 = arith.truncf %70 : vector<8x128xf32> to vector<8x128xbf16>
    %72 = vector.shape_cast %71 : vector<8x128xbf16> to vector<1x8x128xbf16>
    %73 = arith.truncf %67 : vector<8x128xf32> to vector<8x128xbf16>
    %74 = vector.shape_cast %73 : vector<8x128xbf16> to vector<1x8x128xbf16>
    %75 = arith.truncf %68 : vector<8x128xf32> to vector<8x128xbf16>
    %76 = vector.shape_cast %75 : vector<8x128xbf16> to vector<1x8x128xbf16>
    "tpu.trace_start"() <{level = 10 : i32, message = "bqd,bkd->bqk"}> : () -> ()
    %cst_32 = arith.constant dense<0.000000e+00> : vector<1x8x8xf32>
    %77 = tpu.matmul %72, %74, %cst_32 {dimension_numbers = #tpu.dot_dimension_numbers<[2], [2], [1], [1], [0, 0, 0, 1, 1, 1], [0], [0]>} : vector<1x8x128xbf16>, vector<1x8x128xbf16>, vector<1x8x8xf32> -> vector<1x8x8xf32>
    "tpu.trace_stop"() : () -> ()
    %78 = vector.shape_cast %8 : vector<8x8xf32> to vector<1x8x8xf32>
    %79 = arith.addf %77, %78 : vector<1x8x8xf32>
    %cst_33 = arith.constant dense<0xFF800000> : vector<1x8xf32>
    %80 = vector.multi_reduction <maximumf>, %79, %cst_33 [2] : vector<1x8x8xf32> to vector<1x8xf32>
    %81 = vector.shape_cast %80 : vector<1x8xf32> to vector<1x8x1xf32>
    %82 = vector.broadcast %81 : vector<1x8x1xf32> to vector<1x8x8xf32>
    %83 = arith.subf %79, %82 : vector<1x8x8xf32>
    %84 = math.exp %83 : vector<1x8x8xf32>
    %cst_34 = arith.constant dense<0.000000e+00> : vector<1x8xf32>
    %85 = vector.multi_reduction <add>, %84, %cst_34 [2] : vector<1x8x8xf32> to vector<1x8xf32>
    %86 = vector.shape_cast %85 : vector<1x8xf32> to vector<1x8x1xf32>
    %87 = tpu.reciprocal %86 : vector<1x8x1xf32> -> vector<1x8x1xf32>
    %88 = vector.broadcast %87 : vector<1x8x1xf32> to vector<1x8x8xf32>
    %89 = arith.mulf %84, %88 : vector<1x8x8xf32>
    %90 = arith.truncf %89 : vector<1x8x8xf32> to vector<1x8x8xbf16>
    "tpu.trace_start"() <{level = 10 : i32, message = "bqk,bkd->bqd"}> : () -> ()
    %cst_35 = arith.constant dense<0.000000e+00> : vector<1x8x128xf32>
    %91 = tpu.matmul %90, %76, %cst_35 {dimension_numbers = #tpu.dot_dimension_numbers<[2], [1], [1], [2], [0, 0, 0, 1, 1, 2], [0], [0]>} : vector<1x8x8xbf16>, vector<1x8x128xbf16>, vector<1x8x128xf32> -> vector<1x8x128xf32>
    "tpu.trace_stop"() : () -> ()
    %92 = vector.shape_cast %91 : vector<1x8x128xf32> to vector<8x128xf32>
    %93 = arith.truncf %92 : vector<8x128xf32> to vector<8x128xbf16>
    %cst_36 = arith.constant dense<0.000000e+00> : vector<8x128xf32>
    %94 = tpu.matmul %93, %26, %cst_36 {dimension_numbers = #tpu.dot_dimension_numbers<[1], [0], [0], [1], [0, 0, 1, 1], [], []>} : vector<8x128xbf16>, vector<128x128xbf16>, vector<8x128xf32> -> vector<8x128xf32>
    %95 = vector.broadcast %15 : vector<1x128xf32> to vector<8x128xf32>
    %96 = arith.addf %94, %95 : vector<8x128xf32>
    %97 = arith.addf %56, %96 : vector<8x128xf32>
    %98 = arith.negf %66 : vector<8x128xf32>
    %99 = math.exp %98 : vector<8x128xf32>
    %cst_37 = arith.constant 1.000000e+00 : f32
    %100 = vector.broadcast %cst_37 : f32 to vector<8x128xf32>
    %101 = arith.addf %100, %99 : vector<8x128xf32>
    %102 = arith.divf %100, %101 : vector<8x128xf32>
    %103 = arith.mulf %66, %102 : vector<8x128xf32>
    %104 = arith.truncf %103 : vector<8x128xf32> to vector<8x128xbf16>
    %c0_38 = arith.constant 0 : index
    %c0_39 = arith.constant 0 : index
    %105 = vector.load %arg10[%c0_38, %c0_39] : memref<128x8xbf16, #tpu.memory_space<vmem>>, vector<128x8xbf16>
    %cst_40 = arith.constant dense<0.000000e+00> : vector<8x8xf32>
    %106 = tpu.matmul %104, %105, %cst_40 {dimension_numbers = #tpu.dot_dimension_numbers<[1], [0], [0], [1], [0, 0, 1, 1], [], []>} : vector<8x128xbf16>, vector<128x8xbf16>, vector<8x8xf32> -> vector<8x8xf32>
    %107 = vector.shape_cast %89 : vector<1x8x8xf32> to vector<8x8xf32>
    %108 = arith.negf %107 : vector<8x8xf32>
    %109 = math.exp %108 : vector<8x8xf32>
    %cst_41 = arith.constant 1.000000e+00 : f32
    %110 = vector.broadcast %cst_41 : f32 to vector<8x8xf32>
    %111 = arith.addf %110, %109 : vector<8x8xf32>
    %112 = arith.divf %110, %111 : vector<8x8xf32>
    %cst_42 = arith.constant 1.000000e+00 : f32
    %113 = vector.broadcast %cst_42 : f32 to vector<8x8xf32>
    %114 = arith.subf %113, %112 : vector<8x8xf32>
    %cst_43 = arith.constant dense<0.000000e+00> : vector<8x8xf32>
    %115 = tpu.matmul %114, %6, %cst_43 {dimension_numbers = #tpu.dot_dimension_numbers<[1], [0], [0], [1], [0, 0, 1, 1], [], []>} : vector<8x8xf32>, vector<8x8xf32>, vector<8x8xf32> -> vector<8x8xf32>
    %cst_44 = arith.constant 7.000000e+00 : f32
    %116 = vector.broadcast %cst_44 : f32 to vector<8x8xf32>
    %117 = arith.minimumf %115, %116 : vector<8x8xf32>
    %118 = tpu.iota {dimensions = array<i32: 1>} : vector<1x8xi32>
    %119 = arith.sitofp %118 : vector<1x8xi32> to vector<1x8xf32>
    %cst_45 = arith.constant 0.000000e+00 : f32
    %120 = vector.broadcast %cst_45 : f32 to vector<8x8xf32>
    %121 = vector.extract_strided_slice %117 {offsets = [0, 0], sizes = [8, 1], strides = [1, 1]} : vector<8x8xf32> to vector<8x1xf32>
    %122 = vector.broadcast %121 : vector<8x1xf32> to vector<8x8xf32>
    %123 = vector.broadcast %119 : vector<1x8xf32> to vector<8x8xf32>
    %124 = arith.subf %122, %123 : vector<8x8xf32>
    %125 = math.absf %124 : vector<8x8xf32>
    %cst_46 = arith.constant 1.000000e+00 : f32
    %126 = vector.broadcast %cst_46 : f32 to vector<8x8xf32>
    %127 = arith.subf %126, %125 : vector<8x8xf32>
    %cst_47 = arith.constant 0.000000e+00 : f32
    %128 = vector.broadcast %cst_47 : f32 to vector<8x8xf32>
    %129 = arith.maximumf %127, %128 : vector<8x8xf32>
    %130 = arith.addf %120, %129 : vector<8x8xf32>
    %131 = vector.extract_strided_slice %117 {offsets = [0, 1], sizes = [8, 1], strides = [1, 1]} : vector<8x8xf32> to vector<8x1xf32>
    %132 = vector.broadcast %131 : vector<8x1xf32> to vector<8x8xf32>
    %133 = vector.broadcast %119 : vector<1x8xf32> to vector<8x8xf32>
    %134 = arith.subf %132, %133 : vector<8x8xf32>
    %135 = math.absf %134 : vector<8x8xf32>
    %cst_48 = arith.constant 1.000000e+00 : f32
    %136 = vector.broadcast %cst_48 : f32 to vector<8x8xf32>
    %137 = arith.subf %136, %135 : vector<8x8xf32>
    %cst_49 = arith.constant 0.000000e+00 : f32
    %138 = vector.broadcast %cst_49 : f32 to vector<8x8xf32>
    %139 = arith.maximumf %137, %138 : vector<8x8xf32>
    %140 = arith.addf %130, %139 : vector<8x8xf32>
    %141 = vector.extract_strided_slice %117 {offsets = [0, 2], sizes = [8, 1], strides = [1, 1]} : vector<8x8xf32> to vector<8x1xf32>
    %142 = vector.broadcast %141 : vector<8x1xf32> to vector<8x8xf32>
    %143 = vector.broadcast %119 : vector<1x8xf32> to vector<8x8xf32>
    %144 = arith.subf %142, %143 : vector<8x8xf32>
    %145 = math.absf %144 : vector<8x8xf32>
    %cst_50 = arith.constant 1.000000e+00 : f32
    %146 = vector.broadcast %cst_50 : f32 to vector<8x8xf32>
    %147 = arith.subf %146, %145 : vector<8x8xf32>
    %cst_51 = arith.constant 0.000000e+00 : f32
    %148 = vector.broadcast %cst_51 : f32 to vector<8x8xf32>
    %149 = arith.maximumf %147, %148 : vector<8x8xf32>
    %150 = arith.addf %140, %149 : vector<8x8xf32>
    %151 = vector.extract_strided_slice %117 {offsets = [0, 3], sizes = [8, 1], strides = [1, 1]} : vector<8x8xf32> to vector<8x1xf32>
    %152 = vector.broadcast %151 : vector<8x1xf32> to vector<8x8xf32>
    %153 = vector.broadcast %119 : vector<1x8xf32> to vector<8x8xf32>
    %154 = arith.subf %152, %153 : vector<8x8xf32>
    %155 = math.absf %154 : vector<8x8xf32>
    %cst_52 = arith.constant 1.000000e+00 : f32
    %156 = vector.broadcast %cst_52 : f32 to vector<8x8xf32>
    %157 = arith.subf %156, %155 : vector<8x8xf32>
    %cst_53 = arith.constant 0.000000e+00 : f32
    %158 = vector.broadcast %cst_53 : f32 to vector<8x8xf32>
    %159 = arith.maximumf %157, %158 : vector<8x8xf32>
    %160 = arith.addf %150, %159 : vector<8x8xf32>
    %161 = vector.extract_strided_slice %117 {offsets = [0, 4], sizes = [8, 1], strides = [1, 1]} : vector<8x8xf32> to vector<8x1xf32>
    %162 = vector.broadcast %161 : vector<8x1xf32> to vector<8x8xf32>
    %163 = vector.broadcast %119 : vector<1x8xf32> to vector<8x8xf32>
    %164 = arith.subf %162, %163 : vector<8x8xf32>
    %165 = math.absf %164 : vector<8x8xf32>
    %cst_54 = arith.constant 1.000000e+00 : f32
    %166 = vector.broadcast %cst_54 : f32 to vector<8x8xf32>
    %167 = arith.subf %166, %165 : vector<8x8xf32>
    %cst_55 = arith.constant 0.000000e+00 : f32
    %168 = vector.broadcast %cst_55 : f32 to vector<8x8xf32>
    %169 = arith.maximumf %167, %168 : vector<8x8xf32>
    %170 = arith.addf %160, %169 : vector<8x8xf32>
    %171 = vector.extract_strided_slice %117 {offsets = [0, 5], sizes = [8, 1], strides = [1, 1]} : vector<8x8xf32> to vector<8x1xf32>
    %172 = vector.broadcast %171 : vector<8x1xf32> to vector<8x8xf32>
    %173 = vector.broadcast %119 : vector<1x8xf32> to vector<8x8xf32>
    %174 = arith.subf %172, %173 : vector<8x8xf32>
    %175 = math.absf %174 : vector<8x8xf32>
    %cst_56 = arith.constant 1.000000e+00 : f32
    %176 = vector.broadcast %cst_56 : f32 to vector<8x8xf32>
    %177 = arith.subf %176, %175 : vector<8x8xf32>
    %cst_57 = arith.constant 0.000000e+00 : f32
    %178 = vector.broadcast %cst_57 : f32 to vector<8x8xf32>
    %179 = arith.maximumf %177, %178 : vector<8x8xf32>
    %180 = arith.addf %170, %179 : vector<8x8xf32>
    %181 = vector.extract_strided_slice %117 {offsets = [0, 6], sizes = [8, 1], strides = [1, 1]} : vector<8x8xf32> to vector<8x1xf32>
    %182 = vector.broadcast %181 : vector<8x1xf32> to vector<8x8xf32>
    %183 = vector.broadcast %119 : vector<1x8xf32> to vector<8x8xf32>
    %184 = arith.subf %182, %183 : vector<8x8xf32>
    %185 = math.absf %184 : vector<8x8xf32>
    %cst_58 = arith.constant 1.000000e+00 : f32
    %186 = vector.broadcast %cst_58 : f32 to vector<8x8xf32>
    %187 = arith.subf %186, %185 : vector<8x8xf32>
    %cst_59 = arith.constant 0.000000e+00 : f32
    %188 = vector.broadcast %cst_59 : f32 to vector<8x8xf32>
    %189 = arith.maximumf %187, %188 : vector<8x8xf32>
    %190 = arith.addf %180, %189 : vector<8x8xf32>
    %191 = vector.extract_strided_slice %117 {offsets = [0, 7], sizes = [8, 1], strides = [1, 1]} : vector<8x8xf32> to vector<8x1xf32>
    %192 = vector.broadcast %191 : vector<8x1xf32> to vector<8x8xf32>
    %193 = vector.broadcast %119 : vector<1x8xf32> to vector<8x8xf32>
    %194 = arith.subf %192, %193 : vector<8x8xf32>
    %195 = math.absf %194 : vector<8x8xf32>
    %cst_60 = arith.constant 1.000000e+00 : f32
    %196 = vector.broadcast %cst_60 : f32 to vector<8x8xf32>
    %197 = arith.subf %196, %195 : vector<8x8xf32>
    %cst_61 = arith.constant 0.000000e+00 : f32
    %198 = vector.broadcast %cst_61 : f32 to vector<8x8xf32>
    %199 = arith.maximumf %197, %198 : vector<8x8xf32>
    %200 = arith.addf %190, %199 : vector<8x8xf32>
    %201 = arith.mulf %106, %200 : vector<8x8xf32>
    %cst_62 = arith.constant dense<0.000000e+00> : vector<8xf32>
    %202 = vector.multi_reduction <add>, %201, %cst_62 [1] : vector<8x8xf32> to vector<8xf32>
    %203 = vector.shape_cast %202 : vector<8xf32> to vector<8x1xf32>
    %cst_63 = arith.constant 1.250000e-01 : f32
    %204 = vector.broadcast %cst_63 : f32 to vector<8x1xf32>
    %205 = arith.mulf %203, %204 : vector<8x1xf32>
    %206 = vector.broadcast %205 : vector<8x1xf32> to vector<8x128xf32>
    %207 = vector.broadcast %10 : vector<1x128xf32> to vector<8x128xf32>
    %208 = arith.mulf %206, %207 : vector<8x128xf32>
    %209 = arith.addf %97, %208 : vector<8x128xf32>
    %cst_64 = arith.constant dense<0.000000e+00> : vector<8xf32>
    %210 = vector.multi_reduction <add>, %209, %cst_64 [1] : vector<8x128xf32> to vector<8xf32>
    %211 = vector.shape_cast %210 : vector<8xf32> to vector<8x1xf32>
    %cst_65 = arith.constant 3.125000e-02 : f32
    %212 = vector.broadcast %cst_65 : f32 to vector<8x1xf32>
    %213 = arith.mulf %211, %212 : vector<8x1xf32>
    %214 = vector.broadcast %213 : vector<8x1xf32> to vector<8x128xf32>
    %215 = arith.subf %209, %214 : vector<8x128xf32>
    %216 = vector.broadcast %10 : vector<1x128xf32> to vector<8x128xf32>
    %217 = arith.mulf %215, %216 : vector<8x128xf32>
    %218 = arith.mulf %217, %217 : vector<8x128xf32>
    %cst_66 = arith.constant dense<0.000000e+00> : vector<8xf32>
    %219 = vector.multi_reduction <add>, %218, %cst_66 [1] : vector<8x128xf32> to vector<8xf32>
    %220 = vector.shape_cast %219 : vector<8xf32> to vector<8x1xf32>
    %cst_67 = arith.constant 3.125000e-02 : f32
    %221 = vector.broadcast %cst_67 : f32 to vector<8x1xf32>
    %222 = arith.mulf %220, %221 : vector<8x1xf32>
    %cst_68 = arith.constant 9.99999993E-9 : f32
    %223 = vector.broadcast %cst_68 : f32 to vector<8x1xf32>
    %224 = arith.addf %222, %223 : vector<8x1xf32>
    %225 = math.rsqrt %224 : vector<8x1xf32>
    %226 = vector.broadcast %225 : vector<8x1xf32> to vector<8x128xf32>
    %227 = arith.mulf %217, %226 : vector<8x128xf32>
    %228 = vector.broadcast %16 : vector<1x128xf32> to vector<8x128xf32>
    %229 = arith.mulf %227, %228 : vector<8x128xf32>
    %230 = vector.broadcast %17 : vector<1x128xf32> to vector<8x128xf32>
    %231 = arith.addf %229, %230 : vector<8x128xf32>
    %232 = arith.truncf %231 : vector<8x128xf32> to vector<8x128xbf16>
    %cst_69 = arith.constant dense<0.000000e+00> : vector<8x128xf32>
    %233 = tpu.matmul %232, %28, %cst_69 {dimension_numbers = #tpu.dot_dimension_numbers<[1], [0], [0], [1], [0, 0, 1, 1], [], []>} : vector<8x128xbf16>, vector<128x128xbf16>, vector<8x128xf32> -> vector<8x128xf32>
    %234 = vector.broadcast %18 : vector<1x128xf32> to vector<8x128xf32>
    %235 = arith.addf %233, %234 : vector<8x128xf32>
    %cst_70 = arith.constant 0.000000e+00 : f32
    %236 = vector.broadcast %cst_70 : f32 to vector<8x128xf32>
    %237 = arith.maximumf %235, %236 : vector<8x128xf32>
    %238 = arith.truncf %237 : vector<8x128xf32> to vector<8x128xbf16>
    %cst_71 = arith.constant dense<0.000000e+00> : vector<8x128xf32>
    %239 = tpu.matmul %238, %30, %cst_71 {dimension_numbers = #tpu.dot_dimension_numbers<[1], [0], [0], [1], [0, 0, 1, 1], [], []>} : vector<8x128xbf16>, vector<128x128xbf16>, vector<8x128xf32> -> vector<8x128xf32>
    %240 = vector.broadcast %19 : vector<1x128xf32> to vector<8x128xf32>
    %241 = arith.addf %239, %240 : vector<8x128xf32>
    %242 = arith.addf %241, %231 : vector<8x128xf32>
    %c0_72 = arith.constant 0 : index
    %c0_73 = arith.constant 0 : index
    %243 = vector.load %arg15[%c0_72, %c0_73] : memref<8x128xf32, #tpu.memory_space<vmem>>, vector<8x128xf32>
    tpu.vector_store %arg15[%c0_72, %c0_73], %242 {strides = array<i32>} : memref<8x128xf32, #tpu.memory_space<vmem>>, vector<8x128xf32>,
    %c1_i32 = arith.constant 1 : i32
    %244 = arith.cmpi eq, %arg1, %c1_i32 : i32
    %245 = arith.extui %244 : i1 to i32
    %c0_i32_74 = arith.constant 0 : i32
    %246 = arith.cmpi ne, %245, %c0_i32_74 : i32
    scf.if %246 {
      %c0_75 = arith.constant 0 : index
      %c0_76 = arith.constant 0 : index
      %247 = vector.load %arg15[%c0_75, %c0_76] : memref<8x128xf32, #tpu.memory_space<vmem>>, vector<8x128xf32>
      %248 = vector.extract_strided_slice %9 {offsets = [0, 0], sizes = [1, 128], strides = [1, 1]} : vector<3x128xf32> to vector<1x128xf32>
      %249 = vector.extract_strided_slice %9 {offsets = [1, 0], sizes = [1, 128], strides = [1, 1]} : vector<3x128xf32> to vector<1x128xf32>
      %cst_77 = arith.constant dense<0.000000e+00> : vector<8xf32>
      %250 = vector.multi_reduction <add>, %247, %cst_77 [1] : vector<8x128xf32> to vector<8xf32>
      %251 = vector.shape_cast %250 : vector<8xf32> to vector<8x1xf32>
      %cst_78 = arith.constant 3.125000e-02 : f32
      %252 = vector.broadcast %cst_78 : f32 to vector<8x1xf32>
      %253 = arith.mulf %251, %252 : vector<8x1xf32>
      %254 = vector.broadcast %253 : vector<8x1xf32> to vector<8x128xf32>
      %255 = arith.subf %247, %254 : vector<8x128xf32>
      %256 = vector.broadcast %10 : vector<1x128xf32> to vector<8x128xf32>
      %257 = arith.mulf %255, %256 : vector<8x128xf32>
      %258 = arith.mulf %257, %257 : vector<8x128xf32>
      %cst_79 = arith.constant dense<0.000000e+00> : vector<8xf32>
      %259 = vector.multi_reduction <add>, %258, %cst_79 [1] : vector<8x128xf32> to vector<8xf32>
      %260 = vector.shape_cast %259 : vector<8xf32> to vector<8x1xf32>
      %cst_80 = arith.constant 3.125000e-02 : f32
      %261 = vector.broadcast %cst_80 : f32 to vector<8x1xf32>
      %262 = arith.mulf %260, %261 : vector<8x1xf32>
      %cst_81 = arith.constant 9.99999993E-9 : f32
      %263 = vector.broadcast %cst_81 : f32 to vector<8x1xf32>
      %264 = arith.addf %262, %263 : vector<8x1xf32>
      %265 = math.rsqrt %264 : vector<8x1xf32>
      %266 = vector.broadcast %265 : vector<8x1xf32> to vector<8x128xf32>
      %267 = arith.mulf %257, %266 : vector<8x128xf32>
      %268 = vector.broadcast %248 : vector<1x128xf32> to vector<8x128xf32>
      %269 = arith.mulf %267, %268 : vector<8x128xf32>
      %270 = vector.broadcast %249 : vector<1x128xf32> to vector<8x128xf32>
      %271 = arith.addf %269, %270 : vector<8x128xf32>
      %272 = vector.shape_cast %271 : vector<8x128xf32> to vector<1x8x128xf32>
      %c0_82 = arith.constant 0 : index
      %c0_83 = arith.constant 0 : index
      %c0_84 = arith.constant 0 : index
      %273 = vector.load %arg12[%c0_82, %c0_83, %c0_84] : memref<1x8x128xf32, #tpu.memory_space<vmem>>, vector<1x8x128xf32>
      %274 = arith.mulf %272, %273 : vector<1x8x128xf32>
      %cst_85 = arith.constant dense<0.000000e+00> : vector<1x8xf32>
      %275 = vector.multi_reduction <add>, %274, %cst_85 [2] : vector<1x8x128xf32> to vector<1x8xf32>
      %c0_86 = arith.constant 0 : index
      %c0_87 = arith.constant 0 : index
      %c0_88 = arith.constant 0 : index
      %276 = vector.load %arg13[%c0_86, %c0_87, %c0_88] : memref<1x8x128xf32, #tpu.memory_space<vmem>>, vector<1x8x128xf32>
      %277 = arith.mulf %272, %276 : vector<1x8x128xf32>
      %cst_89 = arith.constant dense<0.000000e+00> : vector<1x8xf32>
      %278 = vector.multi_reduction <add>, %277, %cst_89 [2] : vector<1x8x128xf32> to vector<1x8xf32>
      %279 = vector.shape_cast %275 : vector<1x8xf32> to vector<1x1x8xf32>
      %c0_90 = arith.constant 0 : index
      %c0_91 = arith.constant 0 : index
      %c0_92 = arith.constant 0 : index
      %280 = vector.load %arg14[%c0_90, %c0_91, %c0_92] : memref<1x2x8xf32, #tpu.memory_space<vmem>>, vector<1x1x8xf32>
      tpu.vector_store %arg14[%c0_90, %c0_91, %c0_92], %279 {strides = array<i32>} : memref<1x2x8xf32, #tpu.memory_space<vmem>>, vector<1x1x8xf32>,
      %281 = vector.shape_cast %278 : vector<1x8xf32> to vector<1x1x8xf32>
      %c0_93 = arith.constant 0 : index
      %c1 = arith.constant 1 : index
      %c0_94 = arith.constant 0 : index
      %282 = vector.load %arg14[%c0_93, %c1, %c0_94] : memref<1x2x8xf32, #tpu.memory_space<vmem>>, vector<1x1x8xf32>
      tpu.vector_store %arg14[%c0_93, %c1, %c0_94], %281 {strides = array<i32>} : memref<1x2x8xf32, #tpu.memory_space<vmem>>, vector<1x1x8xf32>,
    } else {
    }
    return
  }
  func.func @transform_0(%arg0: i32, %arg1: i32) -> (i32, i32, i32) {
    %c0_i32 = arith.constant 0 : i32
    %c0_i32_0 = arith.constant 0 : i32
    %c0_i32_1 = arith.constant 0 : i32
    return %arg0, %c0_i32, %c0_i32_0 : i32, i32, i32
  }
  func.func @transform_1(%arg0: i32, %arg1: i32) -> (i32, i32, i32) {
    %c0_i32 = arith.constant 0 : i32
    %c0_i32_0 = arith.constant 0 : i32
    %c0_i32_1 = arith.constant 0 : i32
    %c0_i32_2 = arith.constant 0 : i32
    return %c0_i32, %c0_i32_0, %c0_i32_1 : i32, i32, i32
  }
  func.func @transform_2(%arg0: i32, %arg1: i32) -> (i32, i32, i32) {
    %c0_i32 = arith.constant 0 : i32
    %c0_i32_0 = arith.constant 0 : i32
    %c0_i32_1 = arith.constant 0 : i32
    return %arg1, %c0_i32, %c0_i32_0 : i32, i32, i32
  }
  func.func @transform_3(%arg0: i32, %arg1: i32) -> (i32, i32, i32) {
    %c0_i32 = arith.constant 0 : i32
    %c0_i32_0 = arith.constant 0 : i32
    %c0_i32_1 = arith.constant 0 : i32
    return %arg1, %c0_i32, %c0_i32_0 : i32, i32, i32
  }
  func.func @transform_4(%arg0: i32, %arg1: i32) -> (i32, i32, i32) {
    %c0_i32 = arith.constant 0 : i32
    %c0_i32_0 = arith.constant 0 : i32
    %c0_i32_1 = arith.constant 0 : i32
    return %arg1, %c0_i32, %c0_i32_0 : i32, i32, i32
  }
  func.func @transform_5(%arg0: i32, %arg1: i32) -> (i32, i32, i32) {
    %c0_i32 = arith.constant 0 : i32
    %c0_i32_0 = arith.constant 0 : i32
    %c0_i32_1 = arith.constant 0 : i32
    return %arg1, %c0_i32, %c0_i32_0 : i32, i32, i32
  }
  func.func @transform_6(%arg0: i32, %arg1: i32) -> (i32, i32, i32) {
    %c0_i32 = arith.constant 0 : i32
    %c0_i32_0 = arith.constant 0 : i32
    %c0_i32_1 = arith.constant 0 : i32
    return %arg1, %c0_i32, %c0_i32_0 : i32, i32, i32
  }
  func.func @transform_7(%arg0: i32, %arg1: i32) -> (i32, i32, i32) {
    %c0_i32 = arith.constant 0 : i32
    %c0_i32_0 = arith.constant 0 : i32
    %c0_i32_1 = arith.constant 0 : i32
    return %arg1, %c0_i32, %c0_i32_0 : i32, i32, i32
  }
  func.func @transform_8(%arg0: i32, %arg1: i32) -> (i32, i32) {
    %c0_i32 = arith.constant 0 : i32
    %c0_i32_0 = arith.constant 0 : i32
    %c0_i32_1 = arith.constant 0 : i32
    return %c0_i32, %c0_i32_0 : i32, i32
  }
  func.func @transform_9(%arg0: i32, %arg1: i32) -> (i32, i32) {
    %c0_i32 = arith.constant 0 : i32
    %c0_i32_0 = arith.constant 0 : i32
    %c0_i32_1 = arith.constant 0 : i32
    return %c0_i32, %c0_i32_0 : i32, i32
  }
  func.func @transform_10(%arg0: i32, %arg1: i32) -> (i32, i32, i32) {
    %c0_i32 = arith.constant 0 : i32
    %c0_i32_0 = arith.constant 0 : i32
    %c0_i32_1 = arith.constant 0 : i32
    return %arg0, %c0_i32, %c0_i32_0 : i32, i32, i32
  }
  func.func @transform_11(%arg0: i32, %arg1: i32) -> (i32, i32, i32) {
    %c0_i32 = arith.constant 0 : i32
    %c0_i32_0 = arith.constant 0 : i32
    %c0_i32_1 = arith.constant 0 : i32
    return %arg0, %c0_i32, %c0_i32_0 : i32, i32, i32
  }
  func.func @transform_12(%arg0: i32, %arg1: i32) -> (i32, i32, i32) {
    %c0_i32 = arith.constant 0 : i32
    %c0_i32_0 = arith.constant 0 : i32
    %c0_i32_1 = arith.constant 0 : i32
    return %arg0, %c0_i32, %c0_i32_0 : i32, i32, i32
  }
}

</mosaic_0001>

<bundles_post_ra>
// kernel: sasrec_cape_forward.1
= control target key start
LH: loop header
LB: loop body
LE: loop exit
PB: predicated region body
PF: predicated region fallthrough
CT: control target
= control target key end

     0   :  { %s2734_s0 = inlined_call_operand.vmem [shape: f32[2,8,128], index: 0, kind: input, shape index: {}]   ;;  %s2735_s1 = inlined_call_operand.vmem [shape: f32[2,8,8], index: 1, kind: input, shape index: {}]   ;;  %s2736_s2 = inlined_call_operand.vmem [shape: f32[2,8,128], index: 2, kind: input, shape index: {}]   ;;  %s2737_s3 = inlined_call_operand.hbm [shape: bf16[2,128,256], index: 3, kind: input, shape index: {}]   ;;  %s2738_s4 = inlined_call_operand.vmem [shape: f32[2,1,256], index: 4, kind: input, shape index: {}]   ;;  %s2739_s5 = inlined_call_operand.hbm [shape: bf16[2,128,256], index: 5, kind: input, shape index: {}]   ;;  %s2740_s6 = inlined_call_operand.vmem [shape: f32[2,1,256], index: 6, kind: input, shape index: {}]   ;;  %s2741_s7 = inlined_call_operand.vmem [shape: bf16[6,128,128], index: 7, kind: input, shape index: {}]   ;;  %s2742_s8 = inlined_call_operand.vmem [shape: bf16[128,8], index: 8, kind: input, shape index: {}]   ;;  %s2743_s9 = inlined_call_operand.vmem [shape: f32[3,128], index: 9, kind: input, shape index: {}]   ;;  %s2744_s10 = inlined_call_operand.vmem [shape: f32[2,8,128], index: 10, kind: input, shape index: {}]   ;;  %s2745_s11 = inlined_call_operand.vmem [shape: f32[2,8,128], index: 11, kind: input, shape index: {}]   ;;  %s2746_s12 = inlined_call_operand.vmem [shape: f32[2,2,8], index: 12, kind: output, shape index: {}]  }
   0x1   :  { %2754 = sst [smem:[#allocation16_spill]] %s2734_s0 }
   0x2   :  { %2755 = sst [smem:[#allocation17_spill]] %s2735_s1 }
   0x3   :  { %2756 = sst [smem:[#allocation18_spill]] %s2736_s2 }
   0x4   :  { %2757 = sst [smem:[#allocation19_spill]] %s2737_s3 }
   0x5   :  { %2758 = sst [smem:[#allocation20_spill]] %s2738_s4 }
   0x6   :  { %2759 = sst [smem:[#allocation21_spill]] %s2742_s8 }
   0x7   :  { %2760 = sst [smem:[#allocation22_spill]] %s2743_s9 }
   0x8   :  { %2761 = sst [smem:[#allocation23_spill]] %s2746_s12 }
   0x9   :  { %17 = vsyncpa [#allocation4], 0 }
   0xa   :  { %19 = vsyncpa [#allocation4 + $0x1], 0 }
   0xb   :  { %20 = vsyncpa [#allocation6], 0 }
   0xc   :  { %22 = vsyncpa [#allocation6 + $0x1], 0  ;;  %s2368_s21 = smov 0   ;;  %s2370_s22 = smov 0  }
   0xd   :  { %s2372_s23 = smov 0   ;;  %s2374_s24 = smov 0  }
   0xe   :  { %s2376_s25 = smov 0   ;;  %s2378_s26 = smov 0  }
   0xf   :  { %s2380_s27 = smov 0   ;;  %s2382_s28 = smov 0  }
  0x10 LB: > { %2762 = sst [smem:[#allocation9_spill]] %s2271_s23  ;;  %s1695_s29 = sadd.s32 4294967295, %s2291_s28   ;;  %s2291_s28 = sphi %s2382_s28, %s28_s28   ;;  %s2287_s27 = sphi %s2380_s27, %s2787_s27   ;;  %s2283_s26 = sphi %s2378_s26, %s2786_s26   ;;  %s2279_s25 = sphi %s2376_s25, %s2785_s25   ;;  %s2275_s24 = sphi %s2374_s24, %s2784_s24   ;;  %s2271_s23 = sphi %s2372_s23, %s2783_s23   ;;  %s2267_s22 = sphi %s2370_s22, %s2789_s22   ;;  %s2263_s21 = sphi %s2368_s21, %s2788_s21  }
  0x11   : > { %2763 = sst [smem:[#allocation10_spill]] %s2283_s26  ;;  %s37_s30 = sadd.s32 1, %s2283_s26 }
  0x12   : > { %2764 = sst [smem:[#allocation11_spill]] %s2287_s27  ;;  %p38_p0 = scmp.ge.s32.totalorder %s37_s30, 2 }
  0x13   : > { %2765 = sst [smem:[#allocation12_spill]] %s2291_s28  ;;  %s40_s13 = sadd.s32 1, %s2287_s27 }
  0x14   : > { %s120_s14 = sadd.s32 1, %s2271_s23  ;;  %p127_p1 = scmp.ne.s32.totalorder %s2271_s23, %s2267_s22 }
  0x15   : > { %s2791_s30 = smov (%p38_p0, %s37_s30), 0  ;;  %s2793_s13 = smov (!%p38_p0, %s40_s13), %s2287_s27 }
  0x16   : > { %2766 = sst [smem:[#allocation13_spill]] %s2791_s30  ;;  %s117_s15 = ssub.s32 %s2283_s26, %s2791_s30 }
  0x17   : > { %p128_p2 = scmp.eq.s32.totalorder %s2291_s28, 0  ;;  %p42_p3 = scmp.ge.s32.totalorder %s2793_s13, 2 }
  0x18   : > { %p118_p4 = scmp.eq.s32.totalorder %s117_s15, 0  ;;  %p133_p6 = scmp.ne.s32.totalorder %s2267_s22, %s2263_s21 }
  0x19   : > { %p2418_p5 = por %p128_p2, %p127_p1  ;;  %s2795_s13 = smov (%p42_p3, %s2793_s13), 0 }
  0x1a   : > { %2768 = sst [smem:[#allocation14_spill]] %s2795_s13  ;;  %p134_p7 = scmp.eq.s32.totalorder %s1695_s29, 0 }
  0x1b   : > { %s2426_s17 = scalar_select %p118_p4, %s2271_s23, %s120_s14  }
  0x1c   : > { %p2059_p8 = scmp.lt.s32.totalorder %s2291_s28, 4  ;;  %s2430_s18 = sand.u32 1, %s2271_s23  }
  0x1d   : > { %2769 = sst [smem:[#allocation15_spill]] %s2426_s17  ;;  %p2432_p9 = por %p134_p7, %p133_p6 }
  0x1e   : > { %s1699_s20 = sshll.u32 %s2430_s18, 7  ;;  %s1981_s15 = sshll.u32 %s2283_s26, 7 }
  0x1f   : > { %s2771_s3 = sld [smem:[#allocation19_spill]]  ;;  %s408_s1 = scalar_lea.vmem [#allocation3], %s1699_s20 }
  0x20   : > { %s416_s14 = sshll.u32 %s408_s1, 4  ;;  %p2443_p10 = pnand %p2059_p8, %p2418_p5  ;;  %s417_s14 = int_to_ptr.vmem [resolvable:$true] %s416_s14 }
  0x21   : > { %p1705_p11 = scmp.ge.s32.totalorder %s2291_s28, 1  ;;  %p484_p12 = scmp.lt.s32.totalorder %s2291_s28, 5 }
  0x22   : > { %s405_s26 = scalar_lea.sflag [#allocation4], %s2430_s18  ;;  %s2293_s17 = smov 128  }
  0x23   : > { %s2294_s23 = smov 8   ;;  %p485_p13 = pnand %p1705_p11, %p484_p12 }
  0x24   : > { %s442_s30 = scalar_lea.hbm %s2739_s5, %s1981_s15  ;;  %s437_s16 = scalar_lea.vmem [#allocation5], %s1699_s20 }
  0x25   : > { %s413_s27 = scalar_lea.hbm %s2771_s3, %s1981_s15  ;;  %s443_s21 = sshll.u32 %s442_s30, 4  ;;  %s444_s21 = int_to_ptr.hbm [resolvable:$true] %s443_s21 }
  0x26   : > { %s414_s13 = sshll.u32 %s413_s27, 4  ;;  %s445_s3 = sshll.u32 %s437_s16, 4  ;;  %s415_s13 = int_to_ptr.hbm [resolvable:$true] %s414_s13  ;;  %s446_s3 = int_to_ptr.vmem [resolvable:$true] %s445_s3 }
  0x27   : > { %2055 = dma.hbm_to_vmem [thread:$0]  (!%p2443_p10), %s415_s13, 2048, %s417_s14, %s405_s26, %s2293_s17, %s2293_s17, %s2294_s23  }
  0x28   : > { %s434_s8 = scalar_lea.sflag [#allocation6], %s2430_s18  ;;  %488 = sbr.rel (%p485_p13) target bundleno = 2249 (0x8c9), region = 68 }
  0x29   : > { %2058 = dma.hbm_to_vmem [thread:$0]  (!%p2443_p10), %s444_s21, 2048, %s446_s3, %s434_s8, %s2293_s17, %s2293_s17, %s2294_s23  }
  0x2a   : > { %s490_s28 = sand.u32 (!%p485_p13), 1, %s2267_s22  }
  0x2b   : > { %s1706_s9 = sshll.u32 (!%p485_p13), %s490_s28, 7  ;;  %s491_s12 = scalar_lea.sflag (!%p485_p13), [#allocation4], %s490_s28 }
  0x2c   : > { %s2459_s26 = scalar_lea.vmem (!%p485_p13), [#allocation3], %s1706_s9 }
  0x2d   : > { %2254 = dma.done.wait (%p2432_p9), %s491_s12, 2048  }
  0x2e   : > { %2256 = vsyncadd (%p2432_p9), %s491_s12, 4294965248  ;;  %s501_s13 = scalar_lea.sflag [#allocation6], %s490_s28  ;;  %s2465_s20 = scalar_lea.vmem [#allocation5], %s1706_s9 }
  0x2f   : > { %2258 = dma.done.wait (%p2432_p9), %s501_s13, 2048  }
  0x30   : > { %2260 = vsyncadd (%p2432_p9), %s501_s13, 4294965248  ;;  %p580_p0 = scmp.lt.s32.totalorder %s2279_s25, 1  ;;  %p584_p1 = scmp.lt.s32.totalorder %s2275_s24, 1 }
  0x31   : > { %s596_s3 = smul.u32 3, %s2275_s24  ;;  %s2773_s0 = sld [smem:[#allocation16_spill]] }
  0x32   : > { %s2797_s25 = smov (!%p580_p0, %s2279_s25), 1  ;;  %s2774_s2 = sld [smem:[#allocation18_spill]] }
  0x33   : > { %s585_s8 = scalar_select %p584_p1, %s2275_s24, 1 }
  0x34   : > { %s2476_s12 = sshll.u32 %s2797_s25, 3  ;;  %p597_p2 = scmp.lt.s32.totalorder %s596_s3, 5 }
  0x35   : > { %s1709_s17 = sshll.u32 %s585_s8, 3  ;;  %s1710_s14 = sshll.u32 %s585_s8, 1 }
  0x36   : > { %s2775_s4 = sld [smem:[#allocation20_spill]]  ;;  %s2495_s16 = scalar_lea.vmem %s2740_s6, %s1710_s14 }
  0x37   : > { %s583_s28 = scalar_lea.vmem %s2773_s0, %s2476_s12  ;;  %s2799_s3 = smov (!%p597_p2, %s596_s3), 5 }
  0x38   : > { %s2485_s15 = scalar_lea.vmem %s2774_s2, %s1709_s17  ;;  %s606_s23 = scalar_lea.vmem %s2744_s10, %s2476_s12 }
  0x39   : > { %s610_s17 = scalar_lea.vmem %s2745_s11, %s2476_s12  ;;  %s1983_s8 = sshll.u32 %s2799_s3, 6 }
  0x3a   : > { %s1716_s19 = sshll.u32 %s2797_s25, 1  ;;  %s2508_s27 = scalar_lea.vmem %s2741_s7, %s1983_s8 }
  0x3b   : > { %p1717_p3 = scmp.ne.s32.totalorder %s2275_s24, 0 }
  0x3c   : > { %s2490_s1 = scalar_lea.vmem %s2775_s4, %s1710_s14  ;;  %s2776_s14 = sld [smem:[#allocation23_spill]] }
  0x3e   : > { %619 = sbr.rel (%p1717_p3) target bundleno = 69 (0x45), region = 80 }
  0x42   : > { %s2513_s21 = scalar_lea.vmem %s2776_s14, %s1716_s19 }
  0x43   : > { %v620_v0 = vld [vmem:[%s583_s28] sm:$0xff] }
  0x44   : > { %621 = vst [vmem:[#allocation2] sm:$0xff] %v620_v0 }
  0x45 PF: > { %v1840_v2 = vld [vmem:[%s2465_s20 + $0x70] sm:$0xf]  ;;  %v2015_v3 = vld [vmem:[%s2465_s20 + $0x74] sm:$0xf0]  ;;  %v1832_v4 = vld [vmem:[%s2465_s20 + $0x60] sm:$0xf] }
  0x46   : > { %v1841_v5 = vor.u32 %v2015_v3, %v1840_v2  ;;  %v2013_v6 = vld [vmem:[%s2465_s20 + $0x64] sm:$0xf0]  ;;  %v1824_v8 = vld [vmem:[%s2465_s20 + $0x50] sm:$0xf]  ;;  %v2011_v9 = vld [vmem:[%s2465_s20 + $0x54] sm:$0xf0] }
  0x47   : > { %v1833_v7 = vor.u32 %v2013_v6, %v1832_v4  ;;  %v1776_v10 = vld [vmem:[%s2459_s26 + $0x70] sm:$0xf]  ;;  %v1999_v11 = vld [vmem:[%s2459_s26 + $0x74] sm:$0xf0]  ;;  %v1998_v12 = vld [vmem:[%s2459_s26 + $0x74] sm:$0xf]  ;;  %v1825_v16 = vor.u32 %v2011_v9, %v1824_v8 }
  0x48   : > { %933 = vmatpush.bf16.msra.mxu2 %v1841_v5  ;;  %v1778_v13 = vld [vmem:[%s2459_s26 + $0x78] sm:$0xf0]  ;;  %v1777_v14 = vor.u32 %v1999_v11, %v1776_v10  ;;  %v1816_v17 = vld [vmem:[%s2465_s20 + $0x40] sm:$0xf]  ;;  %v2009_v18 = vld [vmem:[%s2465_s20 + $0x44] sm:$0xf0] }
  0x49   : > { %v1781_v15 = vor.u32 %v1998_v12, %v1778_v13  ;;  %v1817_v19 = vor.u32 %v2009_v18, %v1816_v17  ;;  %v1808_v20 = vld [vmem:[%s2465_s20 + $0x30] sm:$0xf]  ;;  %v2007_v21 = vld [vmem:[%s2465_s20 + $0x34] sm:$0xf0]  ;;  %v1800_v23 = vld [vmem:[%s2465_s20 + $0x20] sm:$0xf] }
  0x4a   : > { %821 = vmatpush.bf16.msra.mxu0 %v1777_v14  ;;  %v1809_v22 = vor.u32 %v2007_v21, %v1808_v20  ;;  %v2005_v24 = vld [vmem:[%s2465_s20 + $0x24] sm:$0xf0]  ;;  %v1792_v26 = vld [vmem:[%s2465_s20 + $0x10] sm:$0xf]  ;;  %v2003_v27 = vld [vmem:[%s2465_s20 + $0x14] sm:$0xf0] }
  0x4b   : > { %v2516_v1 = vld [vmem:[#allocation2] sm:$0xff]  ;;  %834 = vmatpush.bf16.msra.mxu1 %v1781_v15  ;;  %v1801_v25 = vor.u32 %v2005_v24, %v1800_v23  ;;  %s2777_s4 = sld [smem:[#allocation22_spill]]  ;;  %v1793_v30 = vor.u32 %v2003_v27, %v1792_v26  ;;  %v1784_v33 = vld [vmem:[%s2465_s20] sm:$0xf]  ;;  %v2001_v34 = vld [vmem:[%s2465_s20 + $0x4] sm:$0xf0] }
  0x4c   : > { %709 = vadd.xlane.f32.xlu0 %v2516_v1  ;;  %934 = vmatpush.bf16.msra.mxu2 %v1833_v7  ;;  %v1785_v36 = vor.u32 %v2001_v34, %v1784_v33  ;;  %v1768_v39 = vld [vmem:[%s2459_s26 + $0x60] sm:$0xf]  ;;  %v1997_v40 = vld [vmem:[%s2459_s26 + $0x64] sm:$0xf0]  ;;  %v1996_v41 = vld [vmem:[%s2459_s26 + $0x64] sm:$0xf]  ;;  %v2566_v54 = vpack.c.bf16 %v2516_v1, %v2516_v1 }
  0x4d   : > { %v1769_v42 = vor.u32 %v1997_v40, %v1768_v39  ;;  %v1770_v43 = vld [vmem:[%s2459_s26 + $0x68] sm:$0xf0]  ;;  %v1760_v45 = vld [vmem:[%s2459_s26 + $0x50] sm:$0xf]  ;;  %v1995_v46 = vld [vmem:[%s2459_s26 + $0x54] sm:$0xf0] }
  0x4e   : > { %v1773_v44 = vor.u32 %v1996_v41, %v1770_v43  ;;  %v1994_v47 = vld [vmem:[%s2459_s26 + $0x54] sm:$0xf]  ;;  %v1761_v48 = vor.u32 %v1995_v46, %v1760_v45  ;;  %v1762_v49 = vld [vmem:[%s2459_s26 + $0x58] sm:$0xf0]  ;;  %v1752_v51 = vld [vmem:[%s2459_s26 + $0x40] sm:$0xf] }
  0x4f   : > { %822 = vmatpush.bf16.msra.mxu0 %v1769_v42  ;;  %v1765_v50 = vor.u32 %v1994_v47, %v1762_v49  ;;  %v1993_v52 = vld [vmem:[%s2459_s26 + $0x44] sm:$0xf0]  ;;  %v1992_v53 = vld [vmem:[%s2459_s26 + $0x44] sm:$0xf]  ;;  %v1754_v56 = vld [vmem:[%s2459_s26 + $0x48] sm:$0xf0] }
  0x50   : > { %935 = vmatpush.bf16.msra.mxu2 %v1825_v16  ;;  %835 = vmatpush.bf16.msra.mxu1 %v1773_v44  ;;  %v1753_v55 = vor.u32 %v1993_v52, %v1752_v51  ;;  %v1757_v57 = vor.u32 %v1992_v53, %v1754_v56  ;;  %v1744_v58 = vld [vmem:[%s2459_s26 + $0x30] sm:$0xf]  ;;  %v1991_v59 = vld [vmem:[%s2459_s26 + $0x34] sm:$0xf0]  ;;  %v1990_v60 = vld [vmem:[%s2459_s26 + $0x34] sm:$0xf] }
  0x51   : > { %v2540_v28 = vld [vmem:[%s2777_s4] sm:$0x7]  ;;  %v1745_v61 = vor.u32 %v1991_v59, %v1744_v58  ;;  %v1746_v62 = vld [vmem:[%s2459_s26 + $0x38] sm:$0xf0]  ;;  %v1736_v0 = vld [vmem:[%s2459_s26 + $0x20] sm:$0xf] }
  0x52   : > { %v2543_v32 = vperm.slane %v2540_v28, 2  ;;  %v1749_v63 = vor.u32 %v1990_v60, %v1746_v62  ;;  %v1988_v2 = vld [vmem:[%s2459_s26 + $0x24] sm:$0xf]  ;;  %v1738_v4 = vld [vmem:[%s2459_s26 + $0x28] sm:$0xf0]  ;;  %s2778_s3 = sld [smem:[#allocation21_spill]] }
  0x53   : > { %823 = vmatpush.bf16.msra.mxu0 %v1761_v48  ;;  %v1741_v5 = vor.u32 %v1988_v2, %v1738_v4  ;;  %v1728_v6 = vld [vmem:[%s2459_s26 + $0x10] sm:$0xf]  ;;  %v1987_v7 = vld [vmem:[%s2459_s26 + $0x14] sm:$0xf0]  ;;  %v1986_v8 = vld [vmem:[%s2459_s26 + $0x14] sm:$0xf] }
  0x54   : > { %936 = vmatpush.bf16.msra.mxu2 %v1817_v19  ;;  %836 = vmatpush.bf16.msra.mxu1 %v1765_v50  ;;  %v1729_v9 = vor.u32 %v1987_v7, %v1728_v6  ;;  %v1730_v10 = vld [vmem:[%s2459_s26 + $0x18] sm:$0xf0]  ;;  %v1720_v11 = vld [vmem:[%s2459_s26] sm:$0xf]  ;;  %v1985_v12 = vld [vmem:[%s2459_s26 + $0x4] sm:$0xf0] }
  0x55   : > { %v1733_v13 = vor.u32 %v1986_v8, %v1730_v10  ;;  %v1984_v14 = vld [vmem:[%s2459_s26 + $0x4] sm:$0xf]  ;;  %v1722_v15 = vld [vmem:[%s2459_s26 + $0x8] sm:$0xf0]  ;;  %v1721_v16 = vor.u32 %v1985_v12, %v1720_v11  ;;  %v2014_v18 = vld [vmem:[%s2465_s20 + $0x74] sm:$0xf] }
  0x56   : > { %v1725_v17 = vor.u32 %v1984_v14, %v1722_v15  ;;  %v1842_v19 = vld [vmem:[%s2465_s20 + $0x78] sm:$0xf0]  ;;  %v2012_v41 = vld [vmem:[%s2465_s20 + $0x64] sm:$0xf]  ;;  %v1834_v42 = vld [vmem:[%s2465_s20 + $0x68] sm:$0xf0] }
  0x57   : > { %824 = vmatpush.bf16.msra.mxu0 %v1753_v55  ;;  %v1845_v21 = vor.u32 %v2014_v18, %v1842_v19  ;;  %v2010_v43 = vld [vmem:[%s2465_s20 + $0x54] sm:$0xf]  ;;  %v1837_v44 = vor.u32 %v2012_v41, %v1834_v42  ;;  %v2008_v46 = vld [vmem:[%s2465_s20 + $0x44] sm:$0xf]  ;;  %v1818_v47 = vld [vmem:[%s2465_s20 + $0x48] sm:$0xf0] }
  0x58   : > { %937 = vmatpush.bf16.msra.mxu2 %v1809_v22  ;;  %837 = vmatpush.bf16.msra.mxu1 %v1757_v57  ;;  %v1821_v48 = vor.u32 %v2008_v46, %v1818_v47  ;;  %v2006_v49 = vld [vmem:[%s2465_s20 + $0x34] sm:$0xf]  ;;  %v1810_v50 = vld [vmem:[%s2465_s20 + $0x38] sm:$0xf0]  ;;  %v2004_v52 = vld [vmem:[%s2465_s20 + $0x24] sm:$0xf] }
  0x59   : > { %946 = vmatpush.bf16.msra.mxu3 %v1845_v21  ;;  %v1813_v51 = vor.u32 %v2006_v49, %v1810_v50  ;;  %v1802_v53 = vld [vmem:[%s2465_s20 + $0x28] sm:$0xf0]  ;;  %v2002_v56 = vld [vmem:[%s2465_s20 + $0x14] sm:$0xf]  ;;  %v1794_v57 = vld [vmem:[%s2465_s20 + $0x18] sm:$0xf0] }
  0x5a   : > { %v1805_v55 = vor.u32 %v2004_v52, %v1802_v53  ;;  %v1797_v58 = vor.u32 %v2002_v56, %v1794_v57  ;;  %v2611_v59 = vld [vmem:[%s2495_s16] sm:$0x3]  ;;  %v1786_v2 = vld [vmem:[%s2465_s20 + $0x8] sm:$0xf0]  ;;  %v2047_v4 = vld [vmem:[%s2778_s3 + $0x38] sm:$0xff]  ;;  %s2779_s25 = sld [smem:[#allocation17_spill]] }
  0x5b   : > { %825 = vmatpush.bf16.msra.mxu0 %v1745_v61  ;;  %v849_v60 = vperm.slane %v2611_v59, 0  ;;  %v2045_v6 = vld [vmem:[%s2778_s3 + $0x28] sm:$0xff]  ;;  %v2044_v7 = vld [vmem:[%s2778_s3 + $0x20] sm:$0xff]  ;;  %v2043_v8 = vld [vmem:[%s2778_s3 + $0x18] sm:$0xff]  ;;  %vm976_vm7 = vcmask 64512   ;;  %v850_v56 = vperm.slane %v2611_v59, 1 }
  0x5c   : > { %938 = vmatpush.bf16.msra.mxu2 %v1801_v25  ;;  %838 = vmatpush.bf16.msra.mxu1 %v1749_v63  ;;  %v2041_v10 = vld [vmem:[%s2778_s3 + $0x8] sm:$0xff]  ;;  %vm1005_vm8 = vcmask 1043456   ;;  %p1978_p4 = scmp.ne.s32.totalorder %s2275_s24, 1 }
  0x5d   : > { %947 = vmatpush.bf16.msra.mxu3 %v1837_v44 }
  0x60   : > { %939 = vmatpush.bf16.msra.mxu2 %v1793_v30  ;;  %839 = vmatpush.bf16.msra.mxu1 %v1741_v5  ;;  %v2589_v30 = vld [vmem:[%s2485_s15] sm:$0xff]  ;;  %v2046_v5 = vld [vmem:[%s2778_s3 + $0x30] sm:$0xff]  ;;  %s2780_s15 = smov %s2779_s25  ;;  %v624_v44 = vld [vmem:[%s2779_s25 + $0x8] sm:$0xff] }
  0x61   : > { %v731_v33 = vperm.slane %v2589_v30, 0 }
  0x64   : > { %940 = vmatpush.bf16.msra.mxu2 %v1785_v36  ;;  %840 = vmatpush.bf16.msra.mxu1 %v1733_v13  ;;  %v733_v36 = vperm.slane %v2589_v30, 1  ;;  %v2040_v13 = vld [vmem:[%s2778_s3] sm:$0xff] }
  0x67   : > { %941 = vmatmul.bf16.vlgmr.msra.gmra.mxu2 %v2566_v54 }
  0x68   : > { %841 = vmatpush.bf16.msra.mxu1 %v1725_v17 }
  0xbf   : > { %v710_v29 = vpop.xlane.xlu0 %709 }
  0xc0   : > { %v711_v31 = vmul.f32 0.03125, %v710_v29 }
  0xc2   : > { %v712_v35 = vsub.f32 %v2516_v1, %v711_v31  ;;  %v1989_v1 = vld [vmem:[%s2459_s26 + $0x24] sm:$0xf0] }
  0xc3   : > { %v1737_v3 = vor.u32 %v1989_v1, %v1736_v0  ;;  %v2000_v1 = vld [vmem:[%s2465_s20 + $0x4] sm:$0xf] }
  0xc4   : > { %v2549_v37 = vmul.f32 %v2543_v32, %v712_v35 }
  0xc5   : > { %826 = vmatpush.bf16.msra.mxu0 %v1737_v3  ;;  %v1789_v3 = vor.u32 %v2000_v1, %v1786_v2 }
  0xc6   : > { %v715_v38 = vmul.f32 %v2549_v37, %v2549_v37 }
  0xc8   : > { %716 = vadd.xlane.f32.xlu0 %v715_v38 }
  0xc9   : > { %827 = vmatpush.bf16.msra.mxu0 %v1729_v9  ;;  %v707_v9 = vld [vmem:[%s2490_s1] sm:$0x3] }
  0xca   : > { %v737_v11 = vperm.slane %v707_v9, 0  ;;  %v738_v12 = vperm.slane %v707_v9, 1 }
  0xcd   : > { %828 = vmatpush.bf16.msra.mxu0 %v1721_v16 }
  0xea   : > { %v942_v61 = vpop.f32.mrf.mxu2 }
  0xeb   : > { %v943_v62 = vadd.f32 %v942_v61, %v849_v60  ;;  %v623_v61 = vld [vmem:[%s2780_s15] sm:$0xff] }
  0xed   : > { %v961_v63 = vpack.c.bf16 %v943_v62, %v943_v62 }
  0xef   : > { %970 = vmatpush.bf16.xpose.msrb.mxu2 %v961_v63 }
  0xf2   : > { %v944_v0 = vpop.f32.mrf.mxu2 }
 0x13b   : > { %v717_v20 = vpop.xlane.xlu0 %716 }
 0x13c   : > { %v718_v22 = vmul.f32 0.03125, %v717_v20 }
 0x13e   : > { %v719_v23 = vadd.f32 1e-08, %v718_v22 }
 0x140   : > { %2143 = vrsqrt.f32 %v719_v23  ;;  %vm726_vm1 = vweird.f32 %v719_v23 }
 0x146   : > { %v2144_v24 = vpop.eup %2143 }
 0x147   : > { %v721_v25 = vmul.f32 %v2144_v24, %v719_v23  ;;  %vm727_vm0 = vweird.f32 %v2144_v24 }
 0x148   : > { %vm728_vm2 = vmor %vm726_vm1, %vm727_vm0 }
 0x149   : > { %v722_v26 = vmul.f32 %v2144_v24, %v721_v25 }
 0x14b   : > { %v723_v27 = vmul.f32 0.5, %v722_v26 }
 0x14d   : > { %v724_v29 = vsub.f32 1.5, %v723_v27 }
 0x14f   : > { %v725_v31 = vmul.f32 %v2144_v24, %v724_v29 }
 0x151   : > { %v729_v34 = vsel %vm728_vm2, %v2144_v24, %v725_v31 }
 0x152   : > { %v730_v35 = vmul.f32 %v729_v34, %v2549_v37  ;;  %v1826_v37 = vld [vmem:[%s2465_s20 + $0x58] sm:$0xf0] }
 0x153   : > { %v1829_v45 = vor.u32 %v2010_v43, %v1826_v37 }
 0x154   : > { %v732_v38 = vmul.f32 %v731_v33, %v730_v35 }
 0x155   : > { %948 = vmatpush.bf16.msra.mxu3 %v1829_v45 }
 0x156   : > { %v2594_v39 = vadd.f32 %v733_v36, %v732_v38 }
 0x158   : > { %v735_v40 = vpack.c.bf16 %v2594_v39, %v2594_v39 }
 0x159   : > { %949 = vmatpush.bf16.msra.mxu3 %v1821_v48 }
 0x15a   : > { %829 = vmatmul.bf16.vlgmr.msra.gmra.mxu0 %v735_v40  ;;  %842 = vmatmul.bf16.vlgmr.msra.gmra.mxu1 %v735_v40 }
 0x15d   : > { %950 = vmatpush.bf16.msra.mxu3 %v1813_v51 }
 0x161   : > { %951 = vmatpush.bf16.msra.mxu3 %v1805_v55 }
 0x165   : > { %952 = vmatpush.bf16.msra.mxu3 %v1797_v58 }
 0x169   : > { %953 = vmatpush.bf16.msra.mxu3 %v1789_v3 }
 0x16c   : > { %954 = vmatmul.bf16.vlgmr.msra.gmra.mxu3 %v2566_v54  ;;  %v2042_v54 = vld [vmem:[%s2778_s3 + $0x10] sm:$0xff] }
 0x16d   : > { %1171 = vmatpush.bf16.msrb.mxu3 %v2047_v4 }
 0x171   : > { %1172 = vmatpush.bf16.msrb.mxu3 %v2046_v5 }
 0x175   : > { %1173 = vmatpush.bf16.msrb.mxu3 %v2045_v6 }
 0x179   : > { %1174 = vmatpush.bf16.msrb.mxu3 %v2044_v7 }
 0x17d   : > { %1175 = vmatpush.bf16.msrb.mxu3 %v2043_v8 }
 0x181   : > { %1176 = vmatpush.bf16.msrb.mxu3 %v2042_v54  ;;  %v2023_v54 = vld [vmem:[%s2508_s27 + $0x38] sm:$0xff] }
 0x182   : > { %1072 = vmatpush.bf16.msra.mxu2 %v2023_v54 }
 0x185   : > { %1177 = vmatpush.bf16.msrb.mxu3 %v2041_v10 }
 0x189   : > { %1178 = vmatpush.bf16.msrb.mxu3 %v2040_v13 }
 0x18d   : > { %1222 = vmatpush.msra.mxu3 %v623_v61 }
 0x1d7   : > { %v830_v14 = vpop.f32.mrf.mxu0  ;;  %v843_v15 = vpop.f32.mrf.mxu1 }
 0x1d8   : > { %v831_v16 = vadd.f32 %v830_v14, %v737_v11  ;;  %v844_v17 = vadd.f32 %v843_v15, %v738_v12  ;;  %v2022_v11 = vld [vmem:[%s2508_s27 + $0x30] sm:$0xff]  ;;  %v2021_v12 = vld [vmem:[%s2508_s27 + $0x28] sm:$0xff]  ;;  %v2020_v14 = vld [vmem:[%s2508_s27 + $0x20] sm:$0xff] }
 0x1d9   : > { %1073 = vmatpush.bf16.msra.mxu2 %v2022_v11 }
 0x1da   : > { %v959_v18 = vmul.f32 0.17677669, %v831_v16  ;;  %v1879_v19 = vmul.f32 -1.442695, %v844_v17  ;;  %v2019_v16 = vld [vmem:[%s2508_s27 + $0x18] sm:$0xff] }
 0x1dc   : > { %v960_v20 = vpack.c.bf16 %v959_v18, %v959_v18  ;;  %2145 = vpow2.f32 %v1879_v19 }
 0x1dd   : > { %1074 = vmatpush.bf16.msra.mxu2 %v2021_v12 }
 0x1de   : > { %971 = vmatmul.bf16.vlgmr.msrb.gmra.mxu2 %v960_v20 }
 0x1df   : > { %v832_v21 = vpop.f32.mrf.mxu0  ;;  %v845_v22 = vpop.f32.mrf.mxu1 }
 0x1e0   : > { %v2017_v21 = vld [vmem:[%s2508_s27 + $0x8] sm:$0xff] }
 0x1e1   : > { %1075 = vmatpush.bf16.msra.mxu2 %v2020_v14 }
 0x1e2   : > { %v2146_v23 = vpop.eup %2145 }
 0x1e3   : > { %v1089_v24 = vadd.f32 1.0, %v2146_v23 }
 0x1e5   : > { %2147 = vrcp.f32 %v1089_v24  ;;  %v1101_v29 = vand.u32 2147483648, %v1089_v24  ;;  %v1099_v33 = vand.u32 2147483647, %v1089_v24  ;;  %vm1095_vm4 = vweird.f32 %v1089_v24  ;;  %1076 = vmatpush.bf16.msra.mxu2 %v2019_v16 }
 0x1e7   : > { %v1102_v35 = vor.u32 1.1754944e-38, %v1101_v29  ;;  %vm1100_vm6 = vcmp.eq.f32.partialorder %v1099_v33, 8.507059e+37  ;;  %v2016_v33 = vld [vmem:[%s2508_s27] sm:$0xff] }
 0x1eb   : > { %v2148_v25 = vpop.eup %2147 }
 0x1ec   : > { %v1091_v26 = vmul.f32 %v2148_v25, %v1089_v24  ;;  %vm1096_vm3 = vweird.f32 %v2148_v25 }
 0x1ed   : > { %vm1097_vm5 = vmor %vm1095_vm4, %vm1096_vm3 }
 0x1ee   : > { %v1092_v27 = vsub.f32 1.0, %v1091_v26 }
 0x1ef   : > { %v955_v42 = vpop.f32.mrf.mxu3 }
 0x1f0   : > { %v1093_v31 = vmul.f32 %v2148_v25, %v1092_v27  ;;  %v956_v57 = vadd.f32 %v955_v42, %v850_v56 }
 0x1f2   : > { %v1094_v34 = vadd.f32 %v2148_v25, %v1093_v31  ;;  %v962_v58 = vpack.c.bf16 %v956_v57, %v956_v57 }
 0x1f4   : > { %v1098_v36 = vsel %vm1097_vm5, %v2148_v25, %v1094_v34  ;;  %v1007_v60 = vsel %vm1005_vm8, %v962_v58, 0 }
 0x1f5   : > { %v1103_v38 = vsel %vm1100_vm6, %v1102_v35, %v1098_v36  ;;  %1016 = vmatpush.bf16.msrb.mxu1 %v1007_v60  ;;  %v2295_v36 = vmov 3  }
 0x1f6   : > { %v1105_v40 = vmul.f32 %v1103_v38, %v844_v17  ;;  %v2018_v17 = vld [vmem:[%s2508_s27 + $0x10] sm:$0xff]  ;;  %2137 = vset.pattern.permute.xlu1 %v2295_v36  ;;  %v2296_v38 = vmov 2  }
 0x1f7   : > { %v957_v43 = vpop.f32.mrf.mxu3  ;;  %1077 = vmatpush.bf16.msra.mxu2 %v2018_v17  ;;  %2136 = vset.pattern.permute.xlu0 %v2296_v38 }
 0x1f8   : > { %v1106_v41 = vpack.c.bf16 %v1105_v40, %v1105_v40  ;;  %v2297_v40 = vmov 0  }
 0x1f9   : > { %2134 = vset.pattern.permute.xlu2 %v2297_v40 }
 0x1fa   : > { %1179 = vmatmul.bf16.vlgmr.msrb.gmra.mxu3 %v1106_v41 }
 0x1fb   : > { %1078 = vmatpush.bf16.msra.mxu2 %v2017_v21 }
 0x1ff   : > { %1079 = vmatpush.bf16.msra.mxu2 %v2016_v33 }
 0x261   : > { %v972_v37 = vpop.f32.mrf.mxu2 }
 0x262   : > { %v973_v45 = vadd.f32 %v972_v37, %v624_v44  ;;  %v2298_v44 = vmov 7   ;;  %v2299_v37 = vmov 1  }
 0x264   : > { %v977_v46 = vsel %vm976_vm7, %v973_v45, -inf }
 0x265   : > { %978 = vmax.xlane.f32.xlu1 %v977_v46  ;;  %v2301_v46 = vmov 5  }
 0x269   : > { %v974_v47 = vpop.f32.mrf.mxu2 }
 0x26a   : > { %v2302_v47 = vmov 6  }
 0x27d   : > { %v2646_v48 = vpop.f32.mrf.mxu3 }
 0x285   : > { %v1182_v49 = vpop.f32.mrf.mxu3 }
 0x2d8   : > { %v979_v50 = vpop.xlane.xlu1 %978 }
 0x2d9   : > { %v980_v51 = vsub.f32 %v973_v45, %v979_v50  ;;  %v2300_v45 = vmov 4  }
 0x2db   : > { %v981_v52 = vmul.f32 1.442695, %v980_v51 }
 0x2dd   : > { %2149 = vpow2.f32 %v981_v52  ;;  %v1228_v52 = vlaneseq }
 0x2e3   : > { %v2150_v53 = vpop.eup %2149 }
 0x2e4   : > { %v983_v55 = vsel %vm976_vm7, %v2150_v53, 0.0 }
 0x2e5   : > { %984 = vadd.xlane.f32.xlu1 %v983_v55 }
 0x358   : > { %v985_v62 = vpop.xlane.xlu1 %984 }
 0x359   : > { %2151 = vrcp.f32 %v985_v62  ;;  %v997_v2 = vand.u32 2147483648, %v985_v62  ;;  %v995_v59 = vand.u32 2147483647, %v985_v62  ;;  %vm991_vm10 = vweird.f32 %v985_v62 }
 0x35b   : > { %v998_v5 = vor.u32 1.1754944e-38, %v997_v2  ;;  %vm996_vm12 = vcmp.eq.f32.partialorder %v995_v59, 8.507059e+37 }
 0x35f   : > { %v2152_v63 = vpop.eup %2151 }
 0x360   : > { %v987_v0 = vmul.f32 %v2152_v63, %v985_v62  ;;  %vm992_vm9 = vweird.f32 %v2152_v63 }
 0x361   : > { %vm993_vm11 = vmor %vm991_vm10, %vm992_vm9 }
 0x362   : > { %v988_v1 = vsub.f32 1.0, %v987_v0 }
 0x364   : > { %v989_v3 = vmul.f32 %v2152_v63, %v988_v1 }
 0x366   : > { %v990_v4 = vadd.f32 %v2152_v63, %v989_v3 }
 0x368   : > { %v994_v6 = vsel %vm993_vm11, %v2152_v63, %v990_v4 }
 0x369   : > { %v999_v7 = vsel %vm996_vm12, %v998_v5, %v994_v6 }
 0x36a   : > { %v1000_v8 = vmul.f32 %v2150_v53, %v999_v7  ;;  %v2663_v53 = vand.u32 127, %v1228_v52  ;;  %v2031_v52 = vld [vmem:[%s2508_s27 + $0x78] sm:$0xff] }
 0x36b   : > { %1386 = vmatpush.bf16.msra.mxu1 %v2031_v52 }
 0x36c   : > { %v1001_v9 = vpack.c.bf16 %v1000_v8, %v1000_v8  ;;  %v1912_v10 = vmul.f32 -1.442695, %v1000_v8  ;;  %v1230_v56 = vcvt.s32.f32 %v2663_v53 }
 0x36e   : > { %1846 = vmatmul.msk.bf16.vlgmr.msrb.gmra.mxu1 %vm976_vm7, %v1001_v9  ;;  %2153 = vpow2.f32 %v1912_v10 }
 0x374   : > { %v2154_v13 = vpop.eup %2153 }
 0x375   : > { %v1187_v15 = vadd.f32 1.0, %v2154_v13 }
 0x377   : > { %2155 = vrcp.f32 %v1187_v15  ;;  %v1199_v22 = vand.u32 2147483648, %v1187_v15  ;;  %v1197_v24 = vand.u32 2147483647, %v1187_v15  ;;  %vm1193_vm14 = vweird.f32 %v1187_v15 }
 0x379   : > { %v1200_v26 = vor.u32 1.1754944e-38, %v1199_v22  ;;  %vm1198_vm0 = vcmp.eq.f32.partialorder %v1197_v24, 8.507059e+37 }
 0x37d   : > { %v2156_v18 = vpop.eup %2155 }
 0x37e   : > { %v1189_v19 = vmul.f32 %v2156_v18, %v1187_v15  ;;  %vm1194_vm13 = vweird.f32 %v2156_v18 }
 0x37f   : > { %vm1195_vm15 = vmor %vm1193_vm14, %vm1194_vm13 }
 0x380   : > { %v1190_v20 = vsub.f32 1.0, %v1189_v19 }
 0x382   : > { %v1191_v23 = vmul.f32 %v2156_v18, %v1190_v20 }
 0x384   : > { %v1192_v25 = vadd.f32 %v2156_v18, %v1191_v23 }
 0x386   : > { %v1196_v27 = vsel %vm1195_vm15, %v2156_v18, %v1192_v25 }
 0x387   : > { %v1201_v29 = vsel %vm1198_vm0, %v1200_v26, %v1196_v27 }
 0x388   : > { %v1203_v31 = vsub.f32 1.0, %v1201_v29 }
 0x38a   : > { %1913 = vmatmul.msk.f32.vlgmr.msra.gmra.mxu3 %vm976_vm7, %v1203_v31 }
 0x3eb   : > { %v1018_v34 = vpop.f32.mrf.mxu1 }
 0x3ec   : > { %v1022_v35 = vpack.c.bf16 %v1018_v34, %v1018_v34 }
 0x3ee   : > { %1080 = vmatmul.bf16.vlgmr.msra.gmra.mxu2 %v1022_v35 }
 0x3f3   : > { %v1020_v41 = vpop.f32.mrf.mxu1 }
 0x40d   : > { %v1224_v42 = vpop.f32.mrf.mxu3 }
 0x40e   : > { %v1227_v43 = vmin.f32 %v1224_v42, 7.0 }
 0x410   : > { %1260 = vperm.xlu1 %2137, %v1227_v43   ;;  %1251 = vperm.xlu0 %2136, %v1227_v43  }
 0x411   : > { %1233 = vperm.xlu2 %2134, %v1227_v43  }
 0x418   : > { %2142 = vset.pattern.permute.xlu0 %v2298_v44 }
 0x419   : > { %2135 = vset.pattern.permute.xlu2 %v2299_v37 }
 0x41a   : > { %1242 = vperm.xlu2 %2135, %v1227_v43  }
 0x422   : > { %2138 = vset.pattern.permute.xlu2 %v2300_v45 }
 0x423   : > { %1269 = vperm.xlu2 %2138, %v1227_v43  }
 0x42b   : > { %2139 = vset.pattern.permute.xlu2 %v2301_v46 }
 0x42c   : > { %1278 = vperm.xlu2 %2139, %v1227_v43  }
 0x434   : > { %2140 = vset.pattern.permute.xlu2 %v2302_v47 }
 0x435   : > { %1287 = vperm.xlu2 %2140, %v1227_v43  }
 0x43d   : > { %2141 = vset.pattern.permute.xlu2 %v2298_v44  ;;  %v1023_v44 = vperm.slane %v2589_v30, 2 }
 0x43e   : > { %1296 = vperm.xlu2 %2141, %v1227_v43  }
 0x46b   : > { %v1234_v49 = vpop.permute.xlu2 %1233 }
 0x46c   : > { %v1236_v60 = vsub.f32 %v1234_v49, %v1230_v56 }
 0x46e   : > { %v1237_v1 = vand.u32 2147483647, %v1236_v60  ;;  %v2028_v60 = vld [vmem:[%s2508_s27 + $0x60] sm:$0xff] }
 0x470   : > { %v1238_v5 = vsub.f32 1.0, %v1237_v1  ;;  %v2039_v1 = vld [vmem:[%s2508_s27 + $0xb8] sm:$0xff] }
 0x471   : > { %v1081_v50 = vpop.f32.mrf.mxu2  ;;  %1450 = vmatpush.bf16.msrb.mxu0 %v2039_v1 }
 0x472   : > { %v1239_v9 = vmax.f32 %v1238_v5, 0.0  ;;  %v1082_v37 = vadd.f32 %v1081_v50, %v1023_v44  ;;  %v2037_v5 = vld [vmem:[%s2508_s27 + $0xa8] sm:$0xff] }
 0x474   : > { %v1243_v51 = vpop.permute.xlu2 %1242  ;;  %v1085_v47 = vadd.f32 %v1082_v37, %v2594_v39  ;;  %v2030_v39 = vld [vmem:[%s2508_s27 + $0x70] sm:$0xff] }
 0x475   : > { %v1245_v58 = vsub.f32 %v1243_v51, %v1230_v56  ;;  %1387 = vmatpush.bf16.msra.mxu1 %v2030_v39 }
 0x477   : > { %v1246_v62 = vand.u32 2147483647, %v1245_v58  ;;  %v2029_v58 = vld [vmem:[%s2508_s27 + $0x68] sm:$0xff] }
 0x479   : > { %v1083_v55 = vpop.f32.mrf.mxu2  ;;  %v1247_v59 = vsub.f32 1.0, %v1246_v62  ;;  %1388 = vmatpush.bf16.msra.mxu1 %v2029_v58  ;;  %v2026_v62 = vld [vmem:[%s2508_s27 + $0x50] sm:$0xff] }
 0x47b   : > { %v1248_v7 = vmax.f32 %v1247_v59, 0.0  ;;  %v2038_v59 = vld [vmem:[%s2508_s27 + $0xb0] sm:$0xff] }
 0x47c   : > { %1451 = vmatpush.bf16.msrb.mxu0 %v2038_v59 }
 0x47d   : > { %v1270_v57 = vpop.permute.xlu2 %1269  ;;  %v1249_v11 = vadd.f32 %v1248_v7, %v1239_v9  ;;  %1389 = vmatpush.bf16.msra.mxu1 %v2028_v60 }
 0x47e   : > { %v1272_v8 = vsub.f32 %v1270_v57, %v1230_v56 }
 0x480   : > { %v1273_v12 = vand.u32 2147483647, %v1272_v8  ;;  %1452 = vmatpush.bf16.msrb.mxu0 %v2037_v5 }
 0x482   : > { %v1252_v61 = vpop.permute.xlu0 %1251  ;;  %v1261_v0 = vpop.permute.xlu1 %1260  ;;  %v1274_v18 = vsub.f32 1.0, %v1273_v12 }
 0x483   : > { %v1254_v63 = vsub.f32 %v1252_v61, %v1230_v56  ;;  %v1263_v4 = vsub.f32 %v1261_v0, %v1230_v56  ;;  %v2027_v61 = vld [vmem:[%s2508_s27 + $0x58] sm:$0xff]  ;;  %v2024_v0 = vld [vmem:[%s2508_s27 + $0x40] sm:$0xff] }
 0x484   : > { %v1275_v23 = vmax.f32 %v1274_v18, 0.0  ;;  %1390 = vmatpush.bf16.msra.mxu1 %v2027_v61 }
 0x485   : > { %v1255_v2 = vand.u32 2147483647, %v1254_v63  ;;  %v1264_v54 = vand.u32 2147483647, %v1263_v4  ;;  %v2025_v63 = vld [vmem:[%s2508_s27 + $0x48] sm:$0xff] }
 0x486   : > { %v1279_v3 = vpop.permute.xlu2 %1278 }
 0x487   : > { %v1256_v6 = vsub.f32 1.0, %v1255_v2  ;;  %v1265_v13 = vsub.f32 1.0, %v1264_v54  ;;  %v1281_v14 = vsub.f32 %v1279_v3, %v1230_v56  ;;  %v2035_v54 = vld [vmem:[%s2508_s27 + $0x98] sm:$0xff] }
 0x488   : > { %1391 = vmatpush.bf16.msra.mxu1 %v2026_v62 }
 0x489   : > { %v1257_v10 = vmax.f32 %v1256_v6, 0.0  ;;  %v1266_v19 = vmax.f32 %v1265_v13, 0.0  ;;  %v1282_v20 = vand.u32 2147483647, %v1281_v14  ;;  %v2036_v6 = vld [vmem:[%s2508_s27 + $0xa0] sm:$0xff]  ;;  %v1332_v14 = vperm.slane %v2589_v30, 3 }
 0x48a   : > { %1453 = vmatpush.bf16.msrb.mxu0 %v2036_v6 }
 0x48b   : > { %v1258_v17 = vadd.f32 %v1257_v10, %v1249_v11  ;;  %v1283_v24 = vsub.f32 1.0, %v1282_v20  ;;  %v2034_v11 = vld [vmem:[%s2508_s27 + $0x90] sm:$0xff] }
 0x48c   : > { %1392 = vmatpush.bf16.msra.mxu1 %v2025_v63 }
 0x48d   : > { %v1267_v22 = vadd.f32 %v1266_v19, %v1258_v17  ;;  %v1284_v31 = vmax.f32 %v1283_v24, 0.0  ;;  %v1334_v17 = vperm.slane %v2589_v30, 4 }
 0x48e   : > { %1454 = vmatpush.bf16.msrb.mxu0 %v2035_v54 }
 0x48f   : > { %v1288_v15 = vpop.permute.xlu2 %1287  ;;  %v1276_v27 = vadd.f32 %v1275_v23, %v1267_v22  ;;  %v2032_v22 = vld [vmem:[%s2508_s27 + $0x80] sm:$0xff]  ;;  %v1337_v23 = vperm.slane %v2589_v30, 5 }
 0x490   : > { %v1290_v16 = vsub.f32 %v1288_v15, %v1230_v56  ;;  %1393 = vmatpush.bf16.msra.mxu1 %v2024_v0 }
 0x491   : > { %v1285_v35 = vadd.f32 %v1284_v31, %v1276_v27  ;;  %v1401_v31 = vperm.slane %v2589_v30, 6 }
 0x492   : > { %v1291_v21 = vand.u32 2147483647, %v1290_v16  ;;  %1455 = vmatpush.bf16.msrb.mxu0 %v2034_v11 }
 0x494   : > { %v1292_v25 = vsub.f32 1.0, %v1291_v21  ;;  %v2033_v21 = vld [vmem:[%s2508_s27 + $0x88] sm:$0xff] }
 0x496   : > { %v1293_v33 = vmax.f32 %v1292_v25, 0.0  ;;  %1456 = vmatpush.bf16.msrb.mxu0 %v2033_v21 }
 0x498   : > { %v1297_v26 = vpop.permute.xlu2 %1296  ;;  %v1294_v38 = vadd.f32 %v1293_v33, %v1285_v35 }
 0x499   : > { %v1299_v29 = vsub.f32 %v1297_v26, %v1230_v56 }
 0x49a   : > { %1457 = vmatpush.bf16.msrb.mxu0 %v2032_v22 }
 0x49b   : > { %v1300_v34 = vand.u32 2147483647, %v1299_v29 }
 0x49d   : > { %v1301_v36 = vsub.f32 1.0, %v1300_v34 }
 0x49f   : > { %v1302_v40 = vmax.f32 %v1301_v36, 0.0 }
 0x4a1   : > { %v1303_v41 = vadd.f32 %v1302_v40, %v1294_v38 }
 0x4a3   : > { %v1304_v42 = vmul.f32 %v1303_v41, %v2646_v48 }
 0x4a5   : > { %v1305_v43 = vsel %vm976_vm7, %v1304_v42, 0.0 }
 0x4a6   : > { %1306 = vadd.xlane.f32.xlu1 %v1305_v43 }
 0x519   : > { %v1307_v45 = vpop.xlane.xlu1 %1306 }
 0x51a   : > { %v1308_v46 = vmul.f32 0.125, %v1307_v45 }
 0x51c   : > { %v1309_v49 = vmul.f32 %v1308_v46, %v2543_v32 }
 0x51e   : > { %v1310_v51 = vadd.f32 %v1309_v49, %v1085_v47 }
 0x520   : > { %1311 = vadd.xlane.f32.xlu2 %v1310_v51 }
 0x593   : > { %v1312_v48 = vpop.xlane.xlu2 %1311 }
 0x594   : > { %v1313_v55 = vmul.f32 0.03125, %v1312_v48 }
 0x596   : > { %v1314_v56 = vsub.f32 %v1310_v51, %v1313_v55 }
 0x598   : > { %v1315_v50 = vmul.f32 %v1314_v56, %v2543_v32 }
 0x59a   : > { %v1316_v57 = vmul.f32 %v1315_v50, %v1315_v50 }
 0x59c   : > { %1317 = vadd.xlane.f32.xlu0 %v1316_v57 }
 0x60f   : > { %v1318_v2 = vpop.xlane.xlu0 %1317 }
 0x610   : > { %v1319_v3 = vmul.f32 0.03125, %v1318_v2 }
 0x612   : > { %v1320_v4 = vadd.f32 1e-08, %v1319_v3 }
 0x614   : > { %2157 = vrsqrt.f32 %v1320_v4  ;;  %vm1327_vm2 = vweird.f32 %v1320_v4 }
 0x61a   : > { %v2158_v7 = vpop.eup %2157 }
 0x61b   : > { %v1322_v8 = vmul.f32 %v2158_v7, %v1320_v4  ;;  %vm1328_vm1 = vweird.f32 %v2158_v7 }
 0x61c   : > { %vm1329_vm3 = vmor %vm1327_vm2, %vm1328_vm1 }
 0x61d   : > { %v1323_v9 = vmul.f32 %v2158_v7, %v1322_v8 }
 0x61f   : > { %v1324_v10 = vmul.f32 0.5, %v1323_v9 }
 0x621   : > { %v1325_v12 = vsub.f32 1.5, %v1324_v10 }
 0x623   : > { %v1326_v13 = vmul.f32 %v2158_v7, %v1325_v12 }
 0x625   : > { %v1330_v15 = vsel %vm1329_vm3, %v2158_v7, %v1326_v13 }
 0x626   : > { %v1331_v16 = vmul.f32 %v1330_v15, %v1315_v50 }
 0x628   : > { %v1333_v18 = vmul.f32 %v1332_v14, %v1331_v16 }
 0x62a   : > { %v1335_v19 = vadd.f32 %v1334_v17, %v1333_v18 }
 0x62c   : > { %v1336_v20 = vpack.c.bf16 %v1335_v19, %v1335_v19 }
 0x62e   : > { %1394 = vmatmul.bf16.vlgmr.msra.gmra.mxu1 %v1336_v20 }
 0x6ab   : > { %v1395_v24 = vpop.f32.mrf.mxu1 }
 0x6ac   : > { %v1396_v25 = vadd.f32 %v1395_v24, %v1337_v23 }
 0x6ae   : > { %v1399_v26 = vmax.f32 %v1396_v25, 0.0 }
 0x6b0   : > { %v1400_v27 = vpack.c.bf16 %v1399_v26, %v1399_v26 }
 0x6b2   : > { %1458 = vmatmul.bf16.vlgmr.msrb.gmra.mxu0 %v1400_v27 }
 0x6b3   : > { %v1397_v29 = vpop.f32.mrf.mxu1 }
 0x72f   : > { %v1459_v33 = vpop.f32.mrf.mxu0 }
 0x730   : > { %v1460_v34 = vadd.f32 %v1459_v33, %v1401_v31 }
 0x732   : > { %v1463_v35 = vadd.f32 %v1460_v34, %v1335_v19 }
 0x733   : > { %1468 = sbr.rel (%p1978_p4) target bundleno = 2249 (0x8c9), region = 84 }
 0x734   : > { %1464 = vst [vmem:[#allocation2] sm:$0xff] %v1463_v35 }
 0x737   : > { %v1461_v36 = vpop.f32.mrf.mxu0 }
 0x738   : > { %v1493_v50 = vperm.slane %v2540_v28, 1  ;;  %v1495_v39 = vld [vmem:[%s606_s23] sm:$0xff]  ;;  %vm1506_vm7 = vcmask 57344  }
 0x739   : > { %v1499_v61 = vld [vmem:[%s610_s17] sm:$0xff] }
 0x73b   : > { %v1469_v38 = vld [vmem:[#allocation2] sm:$0xff] }
 0x73c   : > { %1470 = vadd.xlane.f32.xlu0 %v1469_v38 }
 0x7af   : > { %v1471_v40 = vpop.xlane.xlu0 %1470 }
 0x7b0   : > { %v1472_v41 = vmul.f32 0.03125, %v1471_v40 }
 0x7b2   : > { %v1473_v42 = vsub.f32 %v1469_v38, %v1472_v41 }
 0x7b4   : > { %v1474_v43 = vmul.f32 %v1473_v42, %v2543_v32  ;;  %v1491_v32 = vperm.slane %v2540_v28, 0 }
 0x7b6   : > { %v1475_v44 = vmul.f32 %v1474_v43, %v1474_v43 }
 0x7b8   : > { %1476 = vadd.xlane.f32.xlu0 %v1475_v44 }
 0x82b   : > { %v1477_v37 = vpop.xlane.xlu0 %1476 }
 0x82c   : > { %v1478_v45 = vmul.f32 0.03125, %v1477_v37 }
 0x82e   : > { %v1479_v30 = vadd.f32 1e-08, %v1478_v45 }
 0x830   : > { %2159 = vrsqrt.f32 %v1479_v30  ;;  %vm1486_vm5 = vweird.f32 %v1479_v30 }
 0x836   : > { %v2160_v46 = vpop.eup %2159 }
 0x837   : > { %v1481_v47 = vmul.f32 %v2160_v46, %v1479_v30  ;;  %vm1487_vm4 = vweird.f32 %v2160_v46 }
 0x838   : > { %vm1488_vm6 = vmor %vm1486_vm5, %vm1487_vm4 }
 0x839   : > { %v1482_v49 = vmul.f32 %v2160_v46, %v1481_v47 }
 0x83b   : > { %v1483_v51 = vmul.f32 0.5, %v1482_v49 }
 0x83d   : > { %v1484_v52 = vsub.f32 1.5, %v1483_v51 }
 0x83f   : > { %v1485_v48 = vmul.f32 %v2160_v46, %v1484_v52 }
 0x841   : > { %v1489_v55 = vsel %vm1488_vm6, %v2160_v46, %v1485_v48 }
 0x842   : > { %v1490_v56 = vmul.f32 %v1489_v55, %v1474_v43 }
 0x844   : > { %v1492_v57 = vmul.f32 %v1491_v32, %v1490_v56 }
 0x846   : > { %v1494_v58 = vadd.f32 %v1493_v50, %v1492_v57 }
 0x848   : > { %v1496_v60 = vmul.f32 %v1495_v39, %v1494_v58  ;;  %v1500_v62 = vmul.f32 %v1499_v61, %v1494_v58 }
 0x84a   : > { %1497 = vadd.xlane.f32.xlu1 %v1496_v60 }
 0x852   : > { %1501 = vadd.xlane.f32.xlu1 %v1500_v62 }
 0x8bd   : > { %v1498_v63 = vpop.xlane.xlu1 %1497 }
 0x8be   : > { %v1504_v28 = vperm.slane %v1498_v63, %v2663_v53 }
 0x8c0   : > { %1507 = vst.msk [vmem:[%s2513_s21] sm:$0x1] %vm1506_vm7, %v1504_v28 }
 0x8c5   : > { %v1502_v0 = vpop.xlane.xlu1 %1501 }
 0x8c6   : > { %v1509_v1 = vperm.slane %v1502_v0, %v2663_v53 }
 0x8c8   : > { %1511 = vst.msk [vmem:[%s2513_s21 + $0x1] sm:$0x1] %vm1506_vm7, %v1509_v1 }
 0x8c9 PF: > { %s2781_s23 = sld [smem:[#allocation12_spill]]  ;;  %s2788_s21 = smov %s2267_s22 }
 0x8ca   : > { %s2782_s20 = sld [smem:[#allocation9_spill]] }
 0x8cb   : > { %s2784_s24 = sld [smem:[#allocation10_spill]] }
 0x8cc   : > { %s2785_s25 = sld [smem:[#allocation11_spill]] }
 0x8cd   : > { %s2786_s26 = sld [smem:[#allocation13_spill]] }
 0x8ce   : > { %s2787_s27 = sld [smem:[#allocation14_spill]] }
 0x8cf   : > { %s28_s28 = sadd.s32 1, %s2781_s23   ;;  %s2783_s23 = sld [smem:[#allocation15_spill]] }
 0x8d0   : > { %p25_p5 = scmp.ge.s32.totalorder %s28_s28, 6   ;;  %s2789_s22 = smov %s2782_s20 }
 0x8d2   :  { %27 = sbr.rel (!%p25_p5) target bundleno = 16 (0x10), region = 150 }
 0x8d7   :  { %1531 = vsyncpa [#allocation4], 1 }
 0x8d8   :  { %1533 = vsyncpa [#allocation4 + $0x1], 1 }
 0x8d9   :  { %1534 = vsyncpa [#allocation6], 1 }
 0x8da   :  { %1536 = vsyncpa [#allocation6 + $0x1], 1 }

</bundles_post_ra>
